<compile_context>
chip_gen: v6e
topology: v6e:2x2x1
jax: 0.10.0
libtpu: 0.0.40
codegen_flags: <defaults>
</compile_context>

<pallas_src>
import functools

import jax
import jax.numpy as jnp
from jax.experimental import pallas as pl
from jax.experimental.pallas import tpu as pltpu


_LANE = 128
_SUBLANE = 16          # row-tile granularity (covers bf16 (16,128) packing and f32 (8,128))
_EPS = 1e-5
_NEG_SLOPE = 0.01      # PyTorch nn.LeakyReLU default


def _round_up(x, m):
    return (x + m - 1) // m * m


def _cdiv(a, b):
    return -(-a // b)


def _vmem_capacity_bytes():
    try:
        return int(pltpu.get_tpu_info().vmem_capacity_bytes)
    except Exception:  # unknown generation / interpret mode -> assume small (v7x) VMEM
        return 64 * 1024 * 1024


def _block_spec(shape, index_map, buffers=None):
    """BlockSpec with an optional multi-buffer request, guarded against API drift."""
    if buffers is not None and buffers != 2:
        try:
            return pl.BlockSpec(shape, index_map, pipeline_mode=pl.Buffered(buffers))
        except (TypeError, AttributeError):
            pass
    return pl.BlockSpec(shape, index_map)


def _live_block_bytes(tr, *, n_phases, phase_bufs, owp, ow, kcin, cpad, k,
                      c_item, out_item, z_item, spill):
    """Padded-layout estimate of live pipeline VMEM for one grid step (max over passes)."""
    kcin_lane = _round_up(kcin, _LANE)        # phase last dim sits on lanes
    kcin_sub = _round_up(kcin, _SUBLANE)      # weight second-minor dim sits on sublanes
    phase = n_phases * phase_bufs * owp * tr * kcin_lane * c_item
    weights = 2 * k * kcin_sub * cpad * c_item          # grid-invariant, double-buffered
    acc = 2 * ow * tr * cpad * 4                        # f32 conv accumulator + temp
    outb = 2 * ow * tr * cpad * out_item                # pass-2 output double buffer
    zblk = 2 * ow * tr * cpad * z_item if spill else 0
    small = 64 * 1024                                   # sums / scale / shift blocks
    if spill:
        p1 = phase + weights + acc + zblk
        p2 = zblk + acc + outb
    else:
        p1 = phase + weights + acc
        p2 = phase + weights + acc + outb
    return max(p1, p2) + small


def _choose_tiling(nr, block_budget, **bytes_kw):
    """Pick (rows-per-tile, num-tiles) maximizing the tile under the VMEM block budget
    while minimizing padded rows (and preferring >=2 grid steps when there is work)."""
    tr_budget = _SUBLANE
    while (tr_budget + _SUBLANE <= 2048
           and _live_block_bytes(tr_budget + _SUBLANE, **bytes_kw) <= block_budget):
        tr_budget += _SUBLANE
    g0 = max(1, _cdiv(_round_up(nr, _SUBLANE), tr_budget))
    best = None
    for g in range(g0, g0 + 8):
        tr = _round_up(_cdiv(nr, g), _SUBLANE)
        if tr > tr_budget:
            continue
        waste = tr * g - nr
        key = (waste, 0 if g >= 2 else 1, g)   # low padding, then prefer >=2 steps, then few
        if best is None or key < best[0]:
            best = (key, tr, g)
    if best is None:  # defensive fallback
        tr = min(tr_budget, _round_up(nr, _SUBLANE))
        return tr, _cdiv(_round_up(nr, _SUBLANE), tr)
    return best[1], best[2]


# --------------------------------------------------------------------------------------
# Kernels
# --------------------------------------------------------------------------------------

def _conv_tile(phase_refs, w_ref, *, taps, stride, ow):
    """(OW*TR, Cpad) f32 conv output for one tile of output rows.

    phase_refs[p]: (OWp, TR, K*Cin) -- padded-input columns p, p+stride, ... with the K
                   kernel rows (ky) folded into channels.  The kx shift is a leading-axis
                   slice: a zero-copy view, no sublane relayout.
    w_ref:         (K, K*Cin, Cpad) -- per-kx weight matrices (channels zero-padded).
    """
    acc = None
    for kx in range(taps):
        ph = phase_refs[kx % stride]
        off = kx // stride
        xs = ph[off:off + ow]                            # (OW, TR, KCin) view
        o, tr, kcin = xs.shape
        part = jnp.dot(xs.reshape(o * tr, kcin), w_ref[kx],
                       preferred_element_type=jnp.float32)
        acc = part if acc is None else acc + part
    return acc


def _stats_kernel(*refs, n_phases, taps, stride, ow, spill):
    """Pass 1: per-tile per-channel sum / sum-of-squares (and optional z spill)."""
    phase_refs = refs[:n_phases]
    w_ref = refs[n_phases]
    sums_ref = refs[n_phases + 1]                        # (1, 2, Cpad) per-tile partials

    z = _conv_tile(phase_refs, w_ref, taps=taps, stride=stride, ow=ow)   # (OW*TR, Cpad) f32
    s1 = jnp.sum(z, axis=0)[None, None, :]
    s2 = jnp.sum(z * z, axis=0)[None, None, :]
    sums_ref[...] = jnp.concatenate([s1, s2], axis=1)

    if spill:
        z_ref = refs[n_phases + 2]                       # (OW, TR, Cpad)
        o, tr, c = z_ref.shape
        z_ref[...] = z.reshape(o, tr, c).astype(z_ref.dtype)


def _apply_recompute_kernel(*refs, n_phases, taps, stride, ow):
    """Pass 2 (small-Cin path): recompute conv tile, fused BN affine + LeakyReLU."""
    phase_refs = refs[:n_phases]
    w_ref = refs[n_phases]
    scale_ref = refs[n_phases + 1]                       # (1, Cpad) f32
    shift_ref = refs[n_phases + 2]                       # (1, Cpad) f32
    out_ref = refs[n_phases + 3]                         # (OW, TR, Cpad)

    z = _conv_tile(phase_refs, w_ref, taps=taps, stride=stride, ow=ow)
    y = z * scale_ref[...] + shift_ref[...]
    y = jnp.where(y >= 0, y, _NEG_SLOPE * y)
    out_ref[...] = y.reshape(out_ref.shape).astype(out_ref.dtype)


def _bn_lrelu_kernel(z_ref, scale_ref, shift_ref, out_ref):
    """Pass 2 (spill path): pure elementwise BN affine + LeakyReLU on the spilled conv."""
    z = z_ref[...].astype(jnp.float32)                   # (OW, TR, Cpad)
    y = z * scale_ref[...][None] + shift_ref[...][None]
    out_ref[...] = jnp.where(y >= 0, y, _NEG_SLOPE * y).astype(out_ref.dtype)


# --------------------------------------------------------------------------------------
# Wrapper
# --------------------------------------------------------------------------------------

@functools.partial(
    jax.jit,
    static_argnames=("stride", "kernel_size", "padding", "compute_dtype", "phase_buffers"))
def discriminator_block(x_nchw, w, b, gamma, beta, *, stride, kernel_size=3, padding=1,
                        compute_dtype=jnp.bfloat16, phase_buffers=2):
    """x: (N, Cin, H, W); w: (Cout, Cin, K, K); b/gamma/beta: (Cout,).  Returns NCHW f32."""
    # Conv bias cancels exactly under train-mode BatchNorm (y - mean(y)); accepted for
    # interface fidelity but unused.  NOTE: re-enabling a bias path would also require
    # masking the zero-padded rows out of the batch statistics.
    del b

    N, Cin, H, W = x_nchw.shape
    Cout = w.shape[0]
    K = kernel_size
    s = stride
    OH = (H + 2 * padding - K) // s + 1
    OW = (W + 2 * padding - K) // s + 1

    NR = N * OH                          # independent output rows
    KCin = K * Cin
    CPAD = _round_up(Cout, _LANE)        # lane-dense channel axis
    n_phases = min(s, K)
    OWp = OW + (K - 1) // s              # columns each phase must expose

    c_item = jnp.dtype(compute_dtype).itemsize
    out_dtype = compute_dtype if c_item < 4 else jnp.float32
    out_item = jnp.dtype(out_dtype).itemsize
    z_dtype, z_item = out_dtype, out_item

    # Spill the conv activations from pass 1 (pass 2 becomes pure elementwise BN+LReLU)
    # only when re-reading the K/s-expanded phases would cost more HBM bytes than the
    # lane-padded z spill (typical for mid/late blocks with large Cin).
    spill = OW * CPAD * z_item < n_phases * OWp * KCin * c_item

    cap = _vmem_capacity_bytes()
    big_vmem = cap >= 100 * 1024 * 1024
    block_budget = (14 if big_vmem else 7) * 1024 * 1024
    limit_cap = (96 if big_vmem else 44) * 1024 * 1024

    bytes_kw = dict(n_phases=n_phases, phase_bufs=max(2, phase_buffers), owp=OWp, ow=OW,
                    kcin=KCin, cpad=CPAD, k=K, c_item=c_item, out_item=out_item,
                    z_item=z_item, spill=spill)
    TR, T = _choose_tiling(NR, block_budget, **bytes_kw)
    NRp = TR * T
    grid = (T,)
    live_bytes = _live_block_bytes(TR, **bytes_kw)
    vmem_limit = int(min(int(0.8 * cap), max(limit_cap, 2 * live_bytes)))

    # ---- glue: fold kernel rows into channels and split columns into `stride` phases ----
    # (~K/s x input expansion instead of the K^2/s^2 im2col blow-up).  Phases are laid out
    # (columns, rows, channels) so the per-tap kx shift in the kernel is a leading-axis
    # view and the conv result stays lane-dense along Cpad.
    # TODO(synk): the remaining structural win is to drop this materialization entirely and
    # DMA halo'd rows of the padded input directly (manual double-buffering); kept as XLA
    # glue here for robustness.
    xpt = jnp.transpose(x_nchw, (3, 0, 2, 1))                    # (W, N, H, Cin)
    xpt = jnp.pad(xpt, ((padding, padding), (0, 0), (padding, padding), (0, 0)))
    phases = []
    for p in range(n_phases):
        cols = [xpt[p::s, :, ky:ky + (OH - 1) * s + 1:s, :] for ky in range(K)]
        ph = jnp.concatenate(cols, axis=-1)                      # (Wc, N, OH, K*Cin)
        ph = ph.reshape(ph.shape[0], NR, KCin)
        if ph.shape[0] < OWp:
            ph = jnp.pad(ph, ((0, OWp - ph.shape[0]), (0, 0), (0, 0)))
        else:
            ph = ph[:OWp]
        ph = jnp.pad(ph, ((0, 0), (0, NRp - NR), (0, 0)))        # zero rows: 0 in the sums
        phases.append(ph.astype(compute_dtype))

    # weights: (Cout, Cin, ky, kx) -> (kx, ky*Cin, Cpad), channels zero-padded
    w_k = jnp.transpose(w, (3, 2, 1, 0)).reshape(K, KCin, Cout)
    w_k = jnp.pad(w_k, ((0, 0), (0, 0), (0, CPAD - Cout))).astype(compute_dtype)

    phase_spec = _block_spec((OWp, TR, KCin), lambda i: (0, i, 0), phase_buffers)
    w_spec = pl.BlockSpec((K, KCin, CPAD), lambda i: (0, 0, 0))
    sums_spec = pl.BlockSpec((1, 2, CPAD), lambda i: (i, 0, 0))
    z_spec = pl.BlockSpec((OW, TR, CPAD), lambda i: (0, i, 0))
    vec_spec = pl.BlockSpec((1, CPAD), lambda i: (0, 0))

    cparams = pltpu.CompilerParams(dimension_semantics=("parallel",),
                                   vmem_limit_bytes=vmem_limit)

    # ---- pass 1: per-tile per-channel (sum, sum-of-squares) partials [+ optional z] ----
    # Per-tile partials (not a revisited accumulator) keep the grid axis "parallel" so a
    # v7x megacore shards it; the tiny (T, 2, Cpad) combine happens in XLA below.
    p1_out_shape = [jax.ShapeDtypeStruct((T, 2, CPAD), jnp.float32)]
    p1_out_specs = [sums_spec]
    if spill:
        p1_out_shape.append(jax.ShapeDtypeStruct((OW, NRp, CPAD), z_dtype))
        p1_out_specs.append(z_spec)
    p1 = pl.pallas_call(
        functools.partial(_stats_kernel, n_phases=n_phases, taps=K, stride=s, ow=OW,
                          spill=spill),
        out_shape=p1_out_shape,
        grid=grid,
        in_specs=[phase_spec] * n_phases + [w_spec],
        out_specs=p1_out_specs,
        compiler_params=cparams,
    )(*phases, w_k)
    partials = p1[0]
    z_flat = p1[1] if spill else None

    # ---- tiny per-channel BN fold in XLA: Chan parallel-variance combine of the tile
    # partials (avoids the global E[z^2]-E[z]^2 cancellation) ----
    sum_t = partials[:, 0, :]                                    # (T, Cpad)
    sq_t = partials[:, 1, :]
    rows_t = jnp.clip(NR - jnp.arange(T, dtype=jnp.int32) * TR, 0, TR)
    n_t = (rows_t * OW).astype(jnp.float32)[:, None]             # true per-tile counts
    mean_t = sum_t / jnp.maximum(n_t, 1.0)
    m2_t = sq_t - sum_t * mean_t
    total_n = jnp.float32(N * OH * OW)
    mean = jnp.sum(sum_t, axis=0) / total_n
    m2 = jnp.sum(m2_t, axis=0) + jnp.sum(n_t * (mean_t - mean[None, :]) ** 2, axis=0)
    var = jnp.maximum(m2 / total_n, 0.0)                         # biased (train-mode) var
    inv_std = jax.lax.rsqrt(var + _EPS)
    gamma_p = jnp.pad(gamma.astype(jnp.float32), (0, CPAD - Cout))
    beta_p = jnp.pad(beta.astype(jnp.float32), (0, CPAD - Cout))
    scale = (gamma_p * inv_std).reshape(1, CPAD)
    shift = (beta_p - mean * gamma_p * inv_std).reshape(1, CPAD)

    # ---- pass 2: fused normalize + affine + LeakyReLU (recompute or elementwise) ----
    if spill:
        out_flat = pl.pallas_call(
            _bn_lrelu_kernel,
            out_shape=jax.ShapeDtypeStruct((OW, NRp, CPAD), out_dtype),
            grid=grid,
            in_specs=[z_spec, vec_spec, vec_spec],
            out_specs=z_spec,
            compiler_params=cparams,
        )(z_flat, scale, shift)
    else:
        out_flat = pl.pallas_call(
            functools.partial(_apply_recompute_kernel, n_phases=n_phases, taps=K,
                              stride=s, ow=OW),
            out_shape=jax.ShapeDtypeStruct((OW, NRp, CPAD), out_dtype),
            grid=grid,
            in_specs=[phase_spec] * n_phases + [w_spec, vec_spec, vec_spec],
            out_specs=z_spec,
            compiler_params=cparams,
        )(*phases, w_k, scale, shift)

    # Module contract is NCHW; chained blocks could keep this NHWC-like layout and
    # transpose once at the model boundary to save this extra output pass.
    out = out_flat[:, :NR, :Cout].reshape(OW, N, OH, Cout)
    return jnp.transpose(out, (1, 3, 2, 0)).astype(jnp.float32)


# --------------------------------------------------------------------------------------
# Reference + self-test
# --------------------------------------------------------------------------------------

def _reference(x_nchw, w, b, gamma, beta, *, stride, padding=1):
    """Plain-JAX reference matching PyTorch Conv2d + BatchNorm2d(train) + LeakyReLU."""
    y = jax.lax.conv_general_dilated(
        x_nchw.astype(jnp.float32), w.astype(jnp.float32),
        window_strides=(stride, stride),
        padding=((padding, padding), (padding, padding)),
        dimension_numbers=("NCHW", "OIHW", "NCHW"),
    ) + b.reshape(1, -1, 1, 1)
    mean = jnp.mean(y, axis=(0, 2, 3), keepdims=True)
    var = jnp.mean((y - mean) ** 2, axis=(0, 2, 3), keepdims=True)
    y_hat = (y - mean) * jax.lax.rsqrt(var + _EPS)
    z = y_hat * gamma.reshape(1, -1, 1, 1) + beta.reshape(1, -1, 1, 1)
    return jnp.where(z >= 0, z, _NEG_SLOPE * z)


if __name__ == "__main__":
    def run_case(N, Cin, Cout, H, W, stride, compute_dtype, seed):
        K, pad = 3, 1
        key = jax.random.PRNGKey(seed)
        kx_, kw_, kb_, kg_, kbt_ = jax.random.split(key, 5)
        x = jax.random.normal(kx_, (N, Cin, H, W), dtype=jnp.float32)
        fan_in = Cin * K * K
        bound = 1.0 / (fan_in ** 0.5)
        w = jax.random.uniform(kw_, (Cout, Cin, K, K), jnp.float32, -bound, bound)
        b = jax.random.uniform(kb_, (Cout,), jnp.float32, -bound, bound)
        gamma = 1.0 + 0.1 * jax.random.normal(kg_, (Cout,), jnp.float32)
        beta = 0.1 * jax.random.normal(kbt_, (Cout,), jnp.float32)

        out = discriminator_block(x, w, b, gamma, beta, stride=stride, kernel_size=K,
                                  padding=pad, compute_dtype=compute_dtype)
        out = jax.block_until_ready(out)

        if compute_dtype == jnp.float32:
            ref = _reference(x, w, b, gamma, beta, stride=stride, padding=pad)
            atol = rtol = 2e-4
        else:
            # Compare against a reference whose conv inputs are identically bf16-rounded,
            # with tolerance covering the intentional bf16 output store.
            x16 = x.astype(jnp.bfloat16).astype(jnp.float32)
            w16 = w.astype(jnp.bfloat16).astype(jnp.float32)
            ref = _reference(x16, w16, b, gamma, beta, stride=stride, padding=pad)
            atol = rtol = 2e-2
        assert out.shape == ref.shape == (N, Cout, (H + 2 * pad - K) // stride + 1,
                                          (W + 2 * pad - K) // stride + 1), out.shape
        err = float(jnp.max(jnp.abs(out - ref)))
        assert jnp.allclose(out, ref, atol=atol, rtol=rtol), err

    # 1) small Cin (conv-recompute path), f32 exact-semantics check, multi-tile grid.
    run_case(2, 4, 8, 32, 32, 2, jnp.float32, 0)
    # 2) default bf16 MXU path at the nominal small shapes.
    run_case(2, 4, 8, 16, 16, 2, jnp.bfloat16, 0)
    # 3) larger Cin -> z-spill path (pass 2 is the pure elementwise BN+LeakyReLU kernel).
    run_case(1, 64, 32, 16, 16, 2, jnp.float32, 1)

    print("KERNEL_OK")
</pallas_src>

<mosaic_0001>
module attributes {stable_mosaic.version = 11 : i64} {
  func.func @_stats_kernel(%arg0: i32, %arg1: memref<17x16x12xf32, #tpu.memory_space<vmem>>, %arg2: memref<17x16x12xf32, #tpu.memory_space<vmem>>, %arg3: memref<3x12x128xf32, #tpu.memory_space<vmem>>, %arg4: memref<1x2x128xf32, #tpu.memory_space<vmem>>) attributes {dimension_semantics = [#tpu.dimension_semantics<parallel>], iteration_bounds = array<i64: 2>, scalar_prefetch = 0 : i64, scratch_operands = 0 : i64, tpu.core_type = #tpu.core_type<tc>, window_params = [{transform_indices = @transform_0, window_bounds = array<i64: 17, 16, 12>}, {transform_indices = @transform_1, window_bounds = array<i64: 17, 16, 12>}, {pipeline_mode = #tpu.pipeline_mode<synchronous>, transform_indices = @transform_2, window_bounds = array<i64: 3, 12, 128>}, {transform_indices = @transform_3, window_bounds = array<i64: 1, 2, 128>}]} {
    %c0 = arith.constant 0 : index
    %c0_0 = arith.constant 0 : index
    %c0_1 = arith.constant 0 : index
    %0 = vector.load %arg1[%c0, %c0_0, %c0_1] : memref<17x16x12xf32, #tpu.memory_space<vmem>>, vector<16x16x12xf32>
    %1 = vector.shape_cast %0 : vector<16x16x12xf32> to vector<256x12xf32>
    %c0_2 = arith.constant 0 : index
    %c0_3 = arith.constant 0 : index
    %c0_4 = arith.constant 0 : index
    %2 = vector.load %arg3[%c0_2, %c0_3, %c0_4] : memref<3x12x128xf32, #tpu.memory_space<vmem>>, vector<1x12x128xf32>
    %3 = vector.shape_cast %2 : vector<1x12x128xf32> to vector<12x128xf32>
    %cst = arith.constant dense<0.000000e+00> : vector<256x128xf32>
    %4 = tpu.matmul %1, %3, %cst {dimension_numbers = #tpu.dot_dimension_numbers<[1], [0], [0], [1], [0, 0, 1, 1], [], []>} : vector<256x12xf32>, vector<12x128xf32>, vector<256x128xf32> -> vector<256x128xf32>
    %c0_5 = arith.constant 0 : index
    %c0_6 = arith.constant 0 : index
    %c0_7 = arith.constant 0 : index
    %5 = vector.load %arg2[%c0_5, %c0_6, %c0_7] : memref<17x16x12xf32, #tpu.memory_space<vmem>>, vector<16x16x12xf32>
    %6 = vector.shape_cast %5 : vector<16x16x12xf32> to vector<256x12xf32>
    %c1 = arith.constant 1 : index
    %c0_8 = arith.constant 0 : index
    %c0_9 = arith.constant 0 : index
    %7 = vector.load %arg3[%c1, %c0_8, %c0_9] : memref<3x12x128xf32, #tpu.memory_space<vmem>>, vector<1x12x128xf32>
    %8 = vector.shape_cast %7 : vector<1x12x128xf32> to vector<12x128xf32>
    %cst_10 = arith.constant dense<0.000000e+00> : vector<256x128xf32>
    %9 = tpu.matmul %6, %8, %cst_10 {dimension_numbers = #tpu.dot_dimension_numbers<[1], [0], [0], [1], [0, 0, 1, 1], [], []>} : vector<256x12xf32>, vector<12x128xf32>, vector<256x128xf32> -> vector<256x128xf32>
    %10 = arith.addf %4, %9 : vector<256x128xf32>
    %c1_11 = arith.constant 1 : index
    %c0_12 = arith.constant 0 : index
    %c0_13 = arith.constant 0 : index
    %11 = vector.load %arg1[%c1_11, %c0_12, %c0_13] : memref<17x16x12xf32, #tpu.memory_space<vmem>>, vector<16x16x12xf32>
    %12 = vector.shape_cast %11 : vector<16x16x12xf32> to vector<256x12xf32>
    %c2 = arith.constant 2 : index
    %c0_14 = arith.constant 0 : index
    %c0_15 = arith.constant 0 : index
    %13 = vector.load %arg3[%c2, %c0_14, %c0_15] : memref<3x12x128xf32, #tpu.memory_space<vmem>>, vector<1x12x128xf32>
    %14 = vector.shape_cast %13 : vector<1x12x128xf32> to vector<12x128xf32>
    %cst_16 = arith.constant dense<0.000000e+00> : vector<256x128xf32>
    %15 = tpu.matmul %12, %14, %cst_16 {dimension_numbers = #tpu.dot_dimension_numbers<[1], [0], [0], [1], [0, 0, 1, 1], [], []>} : vector<256x12xf32>, vector<12x128xf32>, vector<256x128xf32> -> vector<256x128xf32>
    %16 = arith.addf %10, %15 : vector<256x128xf32>
    %cst_17 = arith.constant dense<0.000000e+00> : vector<128xf32>
    %17 = vector.multi_reduction <add>, %16, %cst_17 [0] : vector<256x128xf32> to vector<128xf32>
    %18 = vector.shape_cast %17 : vector<128xf32> to vector<1x1x128xf32>
    %19 = arith.mulf %16, %16 : vector<256x128xf32>
    %cst_18 = arith.constant dense<0.000000e+00> : vector<128xf32>
    %20 = vector.multi_reduction <add>, %19, %cst_18 [0] : vector<256x128xf32> to vector<128xf32>
    %21 = vector.shape_cast %20 : vector<128xf32> to vector<1x1x128xf32>
    %22 = tpu.concatenate %18, %21 in 1 : vector<1x1x128xf32>, vector<1x1x128xf32> -> vector<1x2x128xf32>
    %c0_19 = arith.constant 0 : index
    %c0_20 = arith.constant 0 : index
    %c0_21 = arith.constant 0 : index
    %23 = vector.load %arg4[%c0_19, %c0_20, %c0_21] : memref<1x2x128xf32, #tpu.memory_space<vmem>>, vector<1x2x128xf32>
    tpu.vector_store %arg4[%c0_19, %c0_20, %c0_21], %22 {strides = array<i32>} : memref<1x2x128xf32, #tpu.memory_space<vmem>>, vector<1x2x128xf32>,
    return
  }
  func.func @transform_0(%arg0: i32) -> (i32, i32, i32) {
    %c0_i32 = arith.constant 0 : i32
    %c0_i32_0 = arith.constant 0 : i32
    %c0_i32_1 = arith.constant 0 : i32
    return %c0_i32, %arg0, %c0_i32_0 : i32, i32, i32
  }
  func.func @transform_1(%arg0: i32) -> (i32, i32, i32) {
    %c0_i32 = arith.constant 0 : i32
    %c0_i32_0 = arith.constant 0 : i32
    %c0_i32_1 = arith.constant 0 : i32
    return %c0_i32, %arg0, %c0_i32_0 : i32, i32, i32
  }
  func.func @transform_2(%arg0: i32) -> (i32, i32, i32) {
    %c0_i32 = arith.constant 0 : i32
    %c0_i32_0 = arith.constant 0 : i32
    %c0_i32_1 = arith.constant 0 : i32
    %c0_i32_2 = arith.constant 0 : i32
    return %c0_i32, %c0_i32_0, %c0_i32_1 : i32, i32, i32
  }
  func.func @transform_3(%arg0: i32) -> (i32, i32, i32) {
    %c0_i32 = arith.constant 0 : i32
    %c0_i32_0 = arith.constant 0 : i32
    %c0_i32_1 = arith.constant 0 : i32
    return %arg0, %c0_i32, %c0_i32_0 : i32, i32, i32
  }
}

module attributes {stable_mosaic.version = 11 : i64} {
  func.func @_apply_recompute_kernel(%arg0: i32, %arg1: memref<17x16x12xf32, #tpu.memory_space<vmem>>, %arg2: memref<17x16x12xf32, #tpu.memory_space<vmem>>, %arg3: memref<3x12x128xf32, #tpu.memory_space<vmem>>, %arg4: memref<1x128xf32, #tpu.memory_space<vmem>>, %arg5: memref<1x128xf32, #tpu.memory_space<vmem>>, %arg6: memref<16x16x128xf32, #tpu.memory_space<vmem>>) attributes {dimension_semantics = [#tpu.dimension_semantics<parallel>], iteration_bounds = array<i64: 2>, scalar_prefetch = 0 : i64, scratch_operands = 0 : i64, tpu.core_type = #tpu.core_type<tc>, window_params = [{transform_indices = @transform_0, window_bounds = array<i64: 17, 16, 12>}, {transform_indices = @transform_1, window_bounds = array<i64: 17, 16, 12>}, {pipeline_mode = #tpu.pipeline_mode<synchronous>, transform_indices = @transform_2, window_bounds = array<i64: 3, 12, 128>}, {pipeline_mode = #tpu.pipeline_mode<synchronous>, transform_indices = @transform_3, window_bounds = array<i64: 1, 128>}, {pipeline_mode = #tpu.pipeline_mode<synchronous>, transform_indices = @transform_4, window_bounds = array<i64: 1, 128>}, {transform_indices = @transform_5, window_bounds = array<i64: 16, 16, 128>}]} {
    %c0 = arith.constant 0 : index
    %c0_0 = arith.constant 0 : index
    %c0_1 = arith.constant 0 : index
    %0 = vector.load %arg1[%c0, %c0_0, %c0_1] : memref<17x16x12xf32, #tpu.memory_space<vmem>>, vector<16x16x12xf32>
    %1 = vector.shape_cast %0 : vector<16x16x12xf32> to vector<256x12xf32>
    %c0_2 = arith.constant 0 : index
    %c0_3 = arith.constant 0 : index
    %c0_4 = arith.constant 0 : index
    %2 = vector.load %arg3[%c0_2, %c0_3, %c0_4] : memref<3x12x128xf32, #tpu.memory_space<vmem>>, vector<1x12x128xf32>
    %3 = vector.shape_cast %2 : vector<1x12x128xf32> to vector<12x128xf32>
    %cst = arith.constant dense<0.000000e+00> : vector<256x128xf32>
    %4 = tpu.matmul %1, %3, %cst {dimension_numbers = #tpu.dot_dimension_numbers<[1], [0], [0], [1], [0, 0, 1, 1], [], []>} : vector<256x12xf32>, vector<12x128xf32>, vector<256x128xf32> -> vector<256x128xf32>
    %c0_5 = arith.constant 0 : index
    %c0_6 = arith.constant 0 : index
    %c0_7 = arith.constant 0 : index
    %5 = vector.load %arg2[%c0_5, %c0_6, %c0_7] : memref<17x16x12xf32, #tpu.memory_space<vmem>>, vector<16x16x12xf32>
    %6 = vector.shape_cast %5 : vector<16x16x12xf32> to vector<256x12xf32>
    %c1 = arith.constant 1 : index
    %c0_8 = arith.constant 0 : index
    %c0_9 = arith.constant 0 : index
    %7 = vector.load %arg3[%c1, %c0_8, %c0_9] : memref<3x12x128xf32, #tpu.memory_space<vmem>>, vector<1x12x128xf32>
    %8 = vector.shape_cast %7 : vector<1x12x128xf32> to vector<12x128xf32>
    %cst_10 = arith.constant dense<0.000000e+00> : vector<256x128xf32>
    %9 = tpu.matmul %6, %8, %cst_10 {dimension_numbers = #tpu.dot_dimension_numbers<[1], [0], [0], [1], [0, 0, 1, 1], [], []>} : vector<256x12xf32>, vector<12x128xf32>, vector<256x128xf32> -> vector<256x128xf32>
    %10 = arith.addf %4, %9 : vector<256x128xf32>
    %c1_11 = arith.constant 1 : index
    %c0_12 = arith.constant 0 : index
    %c0_13 = arith.constant 0 : index
    %11 = vector.load %arg1[%c1_11, %c0_12, %c0_13] : memref<17x16x12xf32, #tpu.memory_space<vmem>>, vector<16x16x12xf32>
    %12 = vector.shape_cast %11 : vector<16x16x12xf32> to vector<256x12xf32>
    %c2 = arith.constant 2 : index
    %c0_14 = arith.constant 0 : index
    %c0_15 = arith.constant 0 : index
    %13 = vector.load %arg3[%c2, %c0_14, %c0_15] : memref<3x12x128xf32, #tpu.memory_space<vmem>>, vector<1x12x128xf32>
    %14 = vector.shape_cast %13 : vector<1x12x128xf32> to vector<12x128xf32>
    %cst_16 = arith.constant dense<0.000000e+00> : vector<256x128xf32>
    %15 = tpu.matmul %12, %14, %cst_16 {dimension_numbers = #tpu.dot_dimension_numbers<[1], [0], [0], [1], [0, 0, 1, 1], [], []>} : vector<256x12xf32>, vector<12x128xf32>, vector<256x128xf32> -> vector<256x128xf32>
    %16 = arith.addf %10, %15 : vector<256x128xf32>
    %c0_17 = arith.constant 0 : index
    %c0_18 = arith.constant 0 : index
    %17 = vector.load %arg4[%c0_17, %c0_18] : memref<1x128xf32, #tpu.memory_space<vmem>>, vector<1x128xf32>
    %18 = vector.broadcast %17 : vector<1x128xf32> to vector<256x128xf32>
    %19 = arith.mulf %16, %18 : vector<256x128xf32>
    %c0_19 = arith.constant 0 : index
    %c0_20 = arith.constant 0 : index
    %20 = vector.load %arg5[%c0_19, %c0_20] : memref<1x128xf32, #tpu.memory_space<vmem>>, vector<1x128xf32>
    %21 = vector.broadcast %20 : vector<1x128xf32> to vector<256x128xf32>
    %22 = arith.addf %19, %21 : vector<256x128xf32>
    %cst_21 = arith.constant 0.000000e+00 : f32
    %23 = vector.broadcast %cst_21 : f32 to vector<256x128xf32>
    %24 = arith.cmpf oge, %22, %23 : vector<256x128xf32>
    %cst_22 = arith.constant 0.00999999977 : f32
    %25 = vector.broadcast %cst_22 : f32 to vector<256x128xf32>
    %26 = arith.mulf %25, %22 : vector<256x128xf32>
    %27 = arith.select %24, %22, %26 : vector<256x128xi1>, vector<256x128xf32>
    %28 = vector.shape_cast %27 : vector<256x128xf32> to vector<16x16x128xf32>
    %c0_23 = arith.constant 0 : index
    %c0_24 = arith.constant 0 : index
    %c0_25 = arith.constant 0 : index
    %29 = vector.load %arg6[%c0_23, %c0_24, %c0_25] : memref<16x16x128xf32, #tpu.memory_space<vmem>>, vector<16x16x128xf32>
    tpu.vector_store %arg6[%c0_23, %c0_24, %c0_25], %28 {strides = array<i32>} : memref<16x16x128xf32, #tpu.memory_space<vmem>>, vector<16x16x128xf32>,
    return
  }
  func.func @transform_0(%arg0: i32) -> (i32, i32, i32) {
    %c0_i32 = arith.constant 0 : i32
    %c0_i32_0 = arith.constant 0 : i32
    %c0_i32_1 = arith.constant 0 : i32
    return %c0_i32, %arg0, %c0_i32_0 : i32, i32, i32
  }
  func.func @transform_1(%arg0: i32) -> (i32, i32, i32) {
    %c0_i32 = arith.constant 0 : i32
    %c0_i32_0 = arith.constant 0 : i32
    %c0_i32_1 = arith.constant 0 : i32
    return %c0_i32, %arg0, %c0_i32_0 : i32, i32, i32
  }
  func.func @transform_2(%arg0: i32) -> (i32, i32, i32) {
    %c0_i32 = arith.constant 0 : i32
    %c0_i32_0 = arith.constant 0 : i32
    %c0_i32_1 = arith.constant 0 : i32
    %c0_i32_2 = arith.constant 0 : i32
    return %c0_i32, %c0_i32_0, %c0_i32_1 : i32, i32, i32
  }
  func.func @transform_3(%arg0: i32) -> (i32, i32) {
    %c0_i32 = arith.constant 0 : i32
    %c0_i32_0 = arith.constant 0 : i32
    %c0_i32_1 = arith.constant 0 : i32
    return %c0_i32, %c0_i32_0 : i32, i32
  }
  func.func @transform_4(%arg0: i32) -> (i32, i32) {
    %c0_i32 = arith.constant 0 : i32
    %c0_i32_0 = arith.constant 0 : i32
    %c0_i32_1 = arith.constant 0 : i32
    return %c0_i32, %c0_i32_0 : i32, i32
  }
  func.func @transform_5(%arg0: i32) -> (i32, i32, i32) {
    %c0_i32 = arith.constant 0 : i32
    %c0_i32_0 = arith.constant 0 : i32
    %c0_i32_1 = arith.constant 0 : i32
    return %c0_i32, %arg0, %c0_i32_0 : i32, i32, i32
  }
}

</mosaic_0001>

<bundles_post_ra>
// kernel: discriminator_block.2
= control target key start
LH: loop header
LB: loop body
LE: loop exit
PB: predicated region body
PF: predicated region fallthrough
CT: control target
= control target key end

     0   :  { %s2306_s12 = smov 0   ;;  %s2308_s13 = smov 0   ;;  %s2785_s0 = inlined_call_operand.vmem [shape: f32[17,32,12], index: 0, kind: input, shape index: {}]   ;;  %s2786_s1 = inlined_call_operand.vmem [shape: f32[17,32,12], index: 1, kind: input, shape index: {}]   ;;  %s2787_s2 = inlined_call_operand.vmem [shape: f32[3,12,128], index: 2, kind: input, shape index: {}]   ;;  %s2788_s3 = inlined_call_operand.vmem [shape: f32[2,2,128], index: 3, kind: output, shape index: {}]  }
   0x1   :  { %s2310_s14 = smov 0  }
   0x2 LB: > { %s1824_s15 = sadd.s32 4294967295, %s2284_s14   ;;  %s2323_s16 = sadd.s32 1, %s2284_s14   ;;  %s2284_s14 = sphi %s2310_s14, %s2792_s14   ;;  %s2280_s13 = sphi %s2308_s13, %s2791_s13   ;;  %s2276_s12 = sphi %s2306_s12, %s2790_s12  }
   0x3   : > { %s17_s17 = ssub.s32 %s2284_s14, %s2323_s16  ;;  %s20_s18 = sadd.s32 1, %s2280_s13 }
   0x4   : > { %p18_p0 = scmp.eq.s32.totalorder %s17_s17, 0  ;;  %p27_p1 = scmp.ne.s32.totalorder %s2280_s13, %s2276_s12 }
   0x5   : > { %p28_p2 = scmp.eq.s32.totalorder %s2284_s14, 0  ;;  %p1827_p4 = scmp.ge.s32.totalorder %s2284_s14, 2 }
   0x6   : > { %s2332_s19 = scalar_select %p18_p0, %s2280_s13, %s20_s18  }
   0x7   : > { %p2334_p3 = por %p28_p2, %p27_p1  ;;  %129 = sbr.rel (%p1827_p4) target bundleno = 54 (0x36), region = 20 }
   0xc   : > { %132 = sbr.rel (!%p2334_p3) target bundleno = 33 (0x21), region = 24  ;;  %s134_s21 = sand.u32 (%p2334_p3), 1, %s2280_s13  }
   0xd   : > { %s1971_s22 = sshll.u32 (%p2334_p3), %s2284_s14, 4  ;;  %s2235_s23 = smul.u32 (%p2334_p3), 272, %s134_s21 }
   0xe   : > { %s2346_s26 = scalar_lea.vmem (%p2334_p3), %s2785_s0, %s1971_s22 }
   0xf   : > { %v234_v0 = vld [vmem:[%s2346_s26] sm:$0xff] (%p2334_p3)  ;;  %v236_v1 = vld [vmem:[%s2346_s26 + $0x8] sm:$0xff] (%p2334_p3)  ;;  %s2354_s27 = scalar_lea.vmem (%p2334_p3), [#allocation2], %s2235_s23 }
  0x10   : > { %v238_v2 = vld [vmem:[%s2346_s26 + $0x20] sm:$0xff] (%p2334_p3)  ;;  %v240_v3 = vld [vmem:[%s2346_s26 + $0x28] sm:$0xff] (%p2334_p3)  ;;  %235 = vst [vmem:[%s2354_s27] sm:$0xff] (%p2334_p3), %v234_v0  ;;  %237 = vst [vmem:[%s2354_s27 + $0x8] sm:$0xff] (%p2334_p3), %v236_v1 }
  0x11   : > { %v242_v4 = vld [vmem:[%s2346_s26 + $0x40] sm:$0xff]  ;;  %v244_v5 = vld [vmem:[%s2346_s26 + $0x48] sm:$0xff]  ;;  %239 = vst [vmem:[%s2354_s27 + $0x10] sm:$0xff] %v238_v2  ;;  %241 = vst [vmem:[%s2354_s27 + $0x18] sm:$0xff] %v240_v3 }
  0x12   : > { %243 = vst [vmem:[%s2354_s27 + $0x20] sm:$0xff] %v242_v4  ;;  %245 = vst [vmem:[%s2354_s27 + $0x28] sm:$0xff] %v244_v5  ;;  %v246_v6 = vld [vmem:[%s2346_s26 + $0x60] sm:$0xff]  ;;  %v248_v7 = vld [vmem:[%s2346_s26 + $0x68] sm:$0xff] }
  0x13   : > { %v250_v8 = vld [vmem:[%s2346_s26 + $0x80] sm:$0xff]  ;;  %247 = vst [vmem:[%s2354_s27 + $0x30] sm:$0xff] %v246_v6  ;;  %249 = vst [vmem:[%s2354_s27 + $0x38] sm:$0xff] %v248_v7  ;;  %v252_v9 = vld [vmem:[%s2346_s26 + $0x88] sm:$0xff] }
  0x14   : > { %251 = vst [vmem:[%s2354_s27 + $0x40] sm:$0xff] %v250_v8  ;;  %v254_v10 = vld [vmem:[%s2346_s26 + $0xa0] sm:$0xff]  ;;  %v256_v11 = vld [vmem:[%s2346_s26 + $0xa8] sm:$0xff]  ;;  %253 = vst [vmem:[%s2354_s27 + $0x48] sm:$0xff] %v252_v9 }
  0x15   : > { %255 = vst [vmem:[%s2354_s27 + $0x50] sm:$0xff] %v254_v10  ;;  %257 = vst [vmem:[%s2354_s27 + $0x58] sm:$0xff] %v256_v11  ;;  %v258_v12 = vld [vmem:[%s2346_s26 + $0xc0] sm:$0xff]  ;;  %v260_v13 = vld [vmem:[%s2346_s26 + $0xc8] sm:$0xff] }
  0x16   : > { %v262_v14 = vld [vmem:[%s2346_s26 + $0xe0] sm:$0xff]  ;;  %259 = vst [vmem:[%s2354_s27 + $0x60] sm:$0xff] %v258_v12  ;;  %261 = vst [vmem:[%s2354_s27 + $0x68] sm:$0xff] %v260_v13  ;;  %v264_v15 = vld [vmem:[%s2346_s26 + $0xe8] sm:$0xff] }
  0x17   : > { %263 = vst [vmem:[%s2354_s27 + $0x70] sm:$0xff] %v262_v14  ;;  %v266_v16 = vld [vmem:[%s2346_s26 + $0x100] sm:$0xff]  ;;  %v268_v17 = vld [vmem:[%s2346_s26 + $0x108] sm:$0xff]  ;;  %265 = vst [vmem:[%s2354_s27 + $0x78] sm:$0xff] %v264_v15 }
  0x18   : > { %267 = vst [vmem:[%s2354_s27 + $0x80] sm:$0xff] %v266_v16  ;;  %269 = vst [vmem:[%s2354_s27 + $0x88] sm:$0xff] %v268_v17  ;;  %v270_v18 = vld [vmem:[%s2346_s26 + $0x120] sm:$0xff]  ;;  %v272_v19 = vld [vmem:[%s2346_s26 + $0x128] sm:$0xff] }
  0x19   : > { %v274_v20 = vld [vmem:[%s2346_s26 + $0x140] sm:$0xff]  ;;  %271 = vst [vmem:[%s2354_s27 + $0x90] sm:$0xff] %v270_v18  ;;  %273 = vst [vmem:[%s2354_s27 + $0x98] sm:$0xff] %v272_v19  ;;  %v276_v21 = vld [vmem:[%s2346_s26 + $0x148] sm:$0xff] }
  0x1a   : > { %275 = vst [vmem:[%s2354_s27 + $0xa0] sm:$0xff] %v274_v20  ;;  %v278_v22 = vld [vmem:[%s2346_s26 + $0x160] sm:$0xff]  ;;  %v280_v23 = vld [vmem:[%s2346_s26 + $0x168] sm:$0xff]  ;;  %277 = vst [vmem:[%s2354_s27 + $0xa8] sm:$0xff] %v276_v21 }
  0x1b   : > { %279 = vst [vmem:[%s2354_s27 + $0xb0] sm:$0xff] %v278_v22  ;;  %281 = vst [vmem:[%s2354_s27 + $0xb8] sm:$0xff] %v280_v23  ;;  %v282_v24 = vld [vmem:[%s2346_s26 + $0x180] sm:$0xff]  ;;  %v284_v25 = vld [vmem:[%s2346_s26 + $0x188] sm:$0xff] }
  0x1c   : > { %v286_v26 = vld [vmem:[%s2346_s26 + $0x1a0] sm:$0xff]  ;;  %283 = vst [vmem:[%s2354_s27 + $0xc0] sm:$0xff] %v282_v24  ;;  %285 = vst [vmem:[%s2354_s27 + $0xc8] sm:$0xff] %v284_v25  ;;  %v288_v27 = vld [vmem:[%s2346_s26 + $0x1a8] sm:$0xff] }
  0x1d   : > { %287 = vst [vmem:[%s2354_s27 + $0xd0] sm:$0xff] %v286_v26  ;;  %v290_v28 = vld [vmem:[%s2346_s26 + $0x1c0] sm:$0xff]  ;;  %v292_v29 = vld [vmem:[%s2346_s26 + $0x1c8] sm:$0xff]  ;;  %289 = vst [vmem:[%s2354_s27 + $0xd8] sm:$0xff] %v288_v27 }
  0x1e   : > { %291 = vst [vmem:[%s2354_s27 + $0xe0] sm:$0xff] %v290_v28  ;;  %293 = vst [vmem:[%s2354_s27 + $0xe8] sm:$0xff] %v292_v29  ;;  %v294_v30 = vld [vmem:[%s2346_s26 + $0x1e0] sm:$0xff]  ;;  %v296_v31 = vld [vmem:[%s2346_s26 + $0x1e8] sm:$0xff] }
  0x1f   : > { %v298_v32 = vld [vmem:[%s2346_s26 + $0x200] sm:$0xff]  ;;  %295 = vst [vmem:[%s2354_s27 + $0xf0] sm:$0xff] %v294_v30  ;;  %297 = vst [vmem:[%s2354_s27 + $0xf8] sm:$0xff] %v296_v31  ;;  %v300_v33 = vld [vmem:[%s2346_s26 + $0x208] sm:$0xff] }
  0x20   : > { %299 = vst [vmem:[%s2354_s27 + $0x100] sm:$0xff] %v298_v32  ;;  %301 = vst [vmem:[%s2354_s27 + $0x108] sm:$0xff] %v300_v33 }
  0x21 PF: > { %307 = sbr.rel (!%p2334_p3) target bundleno = 54 (0x36), region = 62  ;;  %s309_s28 = sand.u32 (%p2334_p3), 1, %s2280_s13  }
  0x22   : > { %s1972_s29 = sshll.u32 (%p2334_p3), %s2284_s14, 4  ;;  %s2236_s30 = smul.u32 (%p2334_p3), 272, %s309_s28 }
  0x23   : > { %s2425_s6 = scalar_lea.vmem (%p2334_p3), %s2786_s1, %s1972_s29 }
  0x24   : > { %v409_v34 = vld [vmem:[%s2425_s6] sm:$0xff] (%p2334_p3)  ;;  %v411_v35 = vld [vmem:[%s2425_s6 + $0x8] sm:$0xff] (%p2334_p3)  ;;  %s2433_s7 = scalar_lea.vmem (%p2334_p3), [#allocation3], %s2236_s30 }
  0x25   : > { %v413_v36 = vld [vmem:[%s2425_s6 + $0x20] sm:$0xff] (%p2334_p3)  ;;  %v415_v37 = vld [vmem:[%s2425_s6 + $0x28] sm:$0xff] (%p2334_p3)  ;;  %410 = vst [vmem:[%s2433_s7] sm:$0xff] (%p2334_p3), %v409_v34  ;;  %412 = vst [vmem:[%s2433_s7 + $0x8] sm:$0xff] (%p2334_p3), %v411_v35 }
  0x26   : > { %v417_v38 = vld [vmem:[%s2425_s6 + $0x40] sm:$0xff]  ;;  %v419_v39 = vld [vmem:[%s2425_s6 + $0x48] sm:$0xff]  ;;  %414 = vst [vmem:[%s2433_s7 + $0x10] sm:$0xff] %v413_v36  ;;  %416 = vst [vmem:[%s2433_s7 + $0x18] sm:$0xff] %v415_v37 }
  0x27   : > { %418 = vst [vmem:[%s2433_s7 + $0x20] sm:$0xff] %v417_v38  ;;  %420 = vst [vmem:[%s2433_s7 + $0x28] sm:$0xff] %v419_v39  ;;  %v421_v40 = vld [vmem:[%s2425_s6 + $0x60] sm:$0xff]  ;;  %v423_v41 = vld [vmem:[%s2425_s6 + $0x68] sm:$0xff] }
  0x28   : > { %v425_v42 = vld [vmem:[%s2425_s6 + $0x80] sm:$0xff]  ;;  %422 = vst [vmem:[%s2433_s7 + $0x30] sm:$0xff] %v421_v40  ;;  %424 = vst [vmem:[%s2433_s7 + $0x38] sm:$0xff] %v423_v41  ;;  %v427_v43 = vld [vmem:[%s2425_s6 + $0x88] sm:$0xff] }
  0x29   : > { %426 = vst [vmem:[%s2433_s7 + $0x40] sm:$0xff] %v425_v42  ;;  %v429_v44 = vld [vmem:[%s2425_s6 + $0xa0] sm:$0xff]  ;;  %v431_v45 = vld [vmem:[%s2425_s6 + $0xa8] sm:$0xff]  ;;  %428 = vst [vmem:[%s2433_s7 + $0x48] sm:$0xff] %v427_v43 }
  0x2a   : > { %430 = vst [vmem:[%s2433_s7 + $0x50] sm:$0xff] %v429_v44  ;;  %432 = vst [vmem:[%s2433_s7 + $0x58] sm:$0xff] %v431_v45  ;;  %v433_v46 = vld [vmem:[%s2425_s6 + $0xc0] sm:$0xff]  ;;  %v435_v47 = vld [vmem:[%s2425_s6 + $0xc8] sm:$0xff] }
  0x2b   : > { %v437_v48 = vld [vmem:[%s2425_s6 + $0xe0] sm:$0xff]  ;;  %434 = vst [vmem:[%s2433_s7 + $0x60] sm:$0xff] %v433_v46  ;;  %436 = vst [vmem:[%s2433_s7 + $0x68] sm:$0xff] %v435_v47  ;;  %v439_v49 = vld [vmem:[%s2425_s6 + $0xe8] sm:$0xff] }
  0x2c   : > { %438 = vst [vmem:[%s2433_s7 + $0x70] sm:$0xff] %v437_v48  ;;  %v441_v50 = vld [vmem:[%s2425_s6 + $0x100] sm:$0xff]  ;;  %v443_v51 = vld [vmem:[%s2425_s6 + $0x108] sm:$0xff]  ;;  %440 = vst [vmem:[%s2433_s7 + $0x78] sm:$0xff] %v439_v49 }
  0x2d   : > { %442 = vst [vmem:[%s2433_s7 + $0x80] sm:$0xff] %v441_v50  ;;  %444 = vst [vmem:[%s2433_s7 + $0x88] sm:$0xff] %v443_v51  ;;  %v445_v52 = vld [vmem:[%s2425_s6 + $0x120] sm:$0xff]  ;;  %v447_v53 = vld [vmem:[%s2425_s6 + $0x128] sm:$0xff] }
  0x2e   : > { %v449_v54 = vld [vmem:[%s2425_s6 + $0x140] sm:$0xff]  ;;  %446 = vst [vmem:[%s2433_s7 + $0x90] sm:$0xff] %v445_v52  ;;  %448 = vst [vmem:[%s2433_s7 + $0x98] sm:$0xff] %v447_v53  ;;  %v451_v55 = vld [vmem:[%s2425_s6 + $0x148] sm:$0xff] }
  0x2f   : > { %450 = vst [vmem:[%s2433_s7 + $0xa0] sm:$0xff] %v449_v54  ;;  %v453_v56 = vld [vmem:[%s2425_s6 + $0x160] sm:$0xff]  ;;  %v455_v57 = vld [vmem:[%s2425_s6 + $0x168] sm:$0xff]  ;;  %452 = vst [vmem:[%s2433_s7 + $0xa8] sm:$0xff] %v451_v55 }
  0x30   : > { %454 = vst [vmem:[%s2433_s7 + $0xb0] sm:$0xff] %v453_v56  ;;  %456 = vst [vmem:[%s2433_s7 + $0xb8] sm:$0xff] %v455_v57  ;;  %v457_v58 = vld [vmem:[%s2425_s6 + $0x180] sm:$0xff]  ;;  %v459_v59 = vld [vmem:[%s2425_s6 + $0x188] sm:$0xff] }
  0x31   : > { %v461_v60 = vld [vmem:[%s2425_s6 + $0x1a0] sm:$0xff]  ;;  %458 = vst [vmem:[%s2433_s7 + $0xc0] sm:$0xff] %v457_v58  ;;  %460 = vst [vmem:[%s2433_s7 + $0xc8] sm:$0xff] %v459_v59  ;;  %v463_v61 = vld [vmem:[%s2425_s6 + $0x1a8] sm:$0xff] }
  0x32   : > { %462 = vst [vmem:[%s2433_s7 + $0xd0] sm:$0xff] %v461_v60  ;;  %v465_v62 = vld [vmem:[%s2425_s6 + $0x1c0] sm:$0xff]  ;;  %v467_v63 = vld [vmem:[%s2425_s6 + $0x1c8] sm:$0xff]  ;;  %464 = vst [vmem:[%s2433_s7 + $0xd8] sm:$0xff] %v463_v61 }
  0x33   : > { %466 = vst [vmem:[%s2433_s7 + $0xe0] sm:$0xff] %v465_v62  ;;  %468 = vst [vmem:[%s2433_s7 + $0xe8] sm:$0xff] %v467_v63  ;;  %v469_v0 = vld [vmem:[%s2425_s6 + $0x1e0] sm:$0xff]  ;;  %v471_v1 = vld [vmem:[%s2425_s6 + $0x1e8] sm:$0xff] }
  0x34   : > { %v473_v2 = vld [vmem:[%s2425_s6 + $0x200] sm:$0xff]  ;;  %470 = vst [vmem:[%s2433_s7 + $0xf0] sm:$0xff] %v469_v0  ;;  %472 = vst [vmem:[%s2433_s7 + $0xf8] sm:$0xff] %v471_v1  ;;  %v475_v3 = vld [vmem:[%s2425_s6 + $0x208] sm:$0xff] }
  0x35   : > { %474 = vst [vmem:[%s2433_s7 + $0x100] sm:$0xff] %v473_v2  ;;  %476 = vst [vmem:[%s2433_s7 + $0x108] sm:$0xff] %v475_v3 }
  0x36 PF: > { %p1832_p5 = scmp.ge.s32.totalorder %s2284_s14, 1  ;;  %p481_p6 = scmp.lt.s32.totalorder %s2284_s14, 3 }
  0x38   : > { %p482_p7 = pnand %p1832_p5, %p481_p6 }
  0x39   : > { %s488_s17 = sand.u32 (!%p482_p7), 1, %s2276_s12   ;;  %p523_p8 = scmp.lt.s32.totalorder (!%p482_p7), %s1824_s15, 1 }
  0x3a   : > { %485 = sbr.rel (%p482_p7) target bundleno = 381 (0x17d), region = 100 }
  0x3b   : > { %s2508_s18 = smul.u32 (!%p482_p7), 272, %s488_s17 }
  0x3d   : > { %s2519_s23 = scalar_lea.vmem (!%p482_p7), [#allocation3], %s2508_s18  ;;  %s2594_s28 = scalar_lea.vmem (!%p482_p7), [#allocation2], %s2508_s18 }
  0x3f   : > { %v1835_v4 = vld [vmem:[%s2787_s2 + $0x18] sm:$0xf]  ;;  %vm693_vm0 = vcmask 1043456   ;;  %v1834_v5 = vld [vmem:[%s2787_s2 + $0x10] sm:$0xff]  ;;  %vm596_vm1 = vcmask 97280   ;;  %v559_v15 = vld [vmem:[%s2787_s2] sm:$0xff] }
  0x40   : > { %2231 = vmatprep.subr.msk.mxu1 %vm693_vm0, %v1835_v4  ;;  %2075 = vmatprep.subr.msk.mxu0 %vm693_vm0, %v1835_v4  ;;  %v560_v6 = vld [vmem:[%s2787_s2 + $0x8] sm:$0xf]  ;;  %v561_v8 = vld [vmem:[%s2519_s23] sm:$0xff]  ;;  %v563_v12 = vld [vmem:[%s2519_s23 + $0x10] sm:$0xff]  ;;  %s2794_s15 = smov (!%p523_p8, %s1824_s15), 1  ;;  %vm1744_vm2 = vcmask 1040384  }
  0x41   : > { %2233 = vmatpush3.msk.msra.mxu1 %vm693_vm0, %v1835_v4  ;;  %2076 = vmatpush3.msk.msra.mxu0 %vm693_vm0, %v1835_v4  ;;  %v1935_v7 = vld [vmem:[%s2787_s2 + $0x28] sm:$0xf]  ;;  %v577_v9 = vld [vmem:[%s2519_s23 + $0x80] sm:$0xff]  ;;  %v579_v13 = vld [vmem:[%s2519_s23 + $0x90] sm:$0xff]  ;;  %s1833_s29 = sshll.u32 %s2794_s15, 1 }
  0x42   : > { %2232 = vmatprep.subr.mxu1 %v1834_v5  ;;  %2077 = vmatprep.subr.mxu0 %v1834_v5  ;;  %v562_v10 = vld [vmem:[%s2519_s23 + $0x8] sm:$0xff]  ;;  %v564_v14 = vld [vmem:[%s2519_s23 + $0x18] sm:$0xff]  ;;  %v565_v17 = vld [vmem:[%s2519_s23 + $0x20] sm:$0xff]  ;;  %s526_s5 = scalar_lea.vmem %s2788_s3, %s1833_s29 }
  0x43   : > { %2234 = vmatpush3.msra.mxu1 %v1834_v5  ;;  %2078 = vmatpush3.msra.mxu0 %v1834_v5  ;;  %v578_v11 = vld [vmem:[%s2519_s23 + $0x88] sm:$0xff]  ;;  %v580_v16 = vld [vmem:[%s2519_s23 + $0x98] sm:$0xff]  ;;  %v581_v18 = vld [vmem:[%s2519_s23 + $0xa0] sm:$0xff] }
  0x44   : > { %2079 = vmatprep.mubr.msk.f32.mxu0 %vm596_vm1, %v561_v8  ;;  %2103 = vmatprep.mubr.msk.f32.mxu1 %vm596_vm1, %v577_v9  ;;  %v1934_v19 = vld [vmem:[%s2787_s2 + $0x20] sm:$0xff]  ;;  %v566_v20 = vld [vmem:[%s2519_s23 + $0x28] sm:$0xff]  ;;  %v568_v24 = vld [vmem:[%s2519_s23 + $0x38] sm:$0xff] }
  0x45   : > { %2127 = vmatprep.subr.msk.mxu1 %vm693_vm0, %v560_v6  ;;  %2080 = vmatmul.mubr.msk.f32.vlgmr.msra.gmra.mxu0 %vm596_vm1, %v562_v10  ;;  %v582_v21 = vld [vmem:[%s2519_s23 + $0xa8] sm:$0xff]  ;;  %v567_v22 = vld [vmem:[%s2519_s23 + $0x30] sm:$0xff]  ;;  %v584_v25 = vld [vmem:[%s2519_s23 + $0xb8] sm:$0xff] }
  0x46   : > { %2104 = vmatmul.mubr.msk.f32.vlgmr.msra.gmra.mxu1 %vm596_vm1, %v578_v11  ;;  %2179 = vmatprep.subr.msk.mxu0 %vm693_vm0, %v1935_v7  ;;  %v583_v23 = vld [vmem:[%s2519_s23 + $0xb0] sm:$0xff]  ;;  %v569_v26 = vld [vmem:[%s2519_s23 + $0x40] sm:$0xff]  ;;  %v570_v28 = vld [vmem:[%s2519_s23 + $0x48] sm:$0xff] }
  0x47   : > { %2128 = vmatpush3.msk.msra.mxu1 %vm693_vm0, %v560_v6  ;;  %2180 = vmatpush3.msk.msra.mxu0 %vm693_vm0, %v1935_v7  ;;  %v585_v27 = vld [vmem:[%s2519_s23 + $0xc0] sm:$0xff]  ;;  %v586_v29 = vld [vmem:[%s2519_s23 + $0xc8] sm:$0xff]  ;;  %v571_v30 = vld [vmem:[%s2519_s23 + $0x50] sm:$0xff] }
  0x48   : > { %2082 = vmatprep.mubr.msk.f32.mxu0 %vm596_vm1, %v563_v12  ;;  %2106 = vmatprep.mubr.msk.f32.mxu1 %vm596_vm1, %v579_v13  ;;  %v587_v31 = vld [vmem:[%s2519_s23 + $0xd0] sm:$0xff]  ;;  %v572_v32 = vld [vmem:[%s2519_s23 + $0x58] sm:$0xff]  ;;  %v573_v34 = vld [vmem:[%s2519_s23 + $0x60] sm:$0xff] }
  0x49   : > { %2083 = vmatmul.mubr.msk.f32.gmra.mxu0 %vm596_vm1, %v564_v14  ;;  %2129 = vmatprep.subr.mxu1 %v559_v15  ;;  %v588_v33 = vld [vmem:[%s2519_s23 + $0xd8] sm:$0xff]  ;;  %v589_v35 = vld [vmem:[%s2519_s23 + $0xe0] sm:$0xff]  ;;  %v574_v36 = vld [vmem:[%s2519_s23 + $0x68] sm:$0xff] }
  0x4a   : > { %2107 = vmatmul.mubr.msk.f32.gmra.mxu1 %vm596_vm1, %v580_v16  ;;  %2085 = vmatprep.mubr.msk.f32.mxu0 %vm596_vm1, %v565_v17  ;;  %v590_v37 = vld [vmem:[%s2519_s23 + $0xe8] sm:$0xff]  ;;  %v575_v38 = vld [vmem:[%s2519_s23 + $0x70] sm:$0xff]  ;;  %v576_v40 = vld [vmem:[%s2519_s23 + $0x78] sm:$0xff] }
  0x4b   : > { %2109 = vmatprep.mubr.msk.f32.mxu1 %vm596_vm1, %v581_v18  ;;  %2130 = vmatpush3.msra.mxu1 %v559_v15  ;;  %v591_v39 = vld [vmem:[%s2519_s23 + $0xf0] sm:$0xff]  ;;  %v592_v41 = vld [vmem:[%s2519_s23 + $0xf8] sm:$0xff]  ;;  %v527_v43 = vld [vmem:[%s2594_s28] sm:$0xff] }
  0x4c   : > { %2181 = vmatprep.subr.mxu0 %v1934_v19  ;;  %v1902_v42 = vld [vmem:[%s2594_s28 + $0x10] sm:$0xff]  ;;  %v1903_v44 = vld [vmem:[%s2594_s28 + $0x18] sm:$0xff]  ;;  %v528_v45 = vld [vmem:[%s2594_s28 + $0x8] sm:$0xff] }
  0x4d   : > { %2086 = vmatmul.mubr.msk.f32.gmra.mxu0 %vm596_vm1, %v566_v20  ;;  %v1904_v46 = vld [vmem:[%s2594_s28 + $0x20] sm:$0xff]  ;;  %v1905_v47 = vld [vmem:[%s2594_s28 + $0x28] sm:$0xff]  ;;  %v1906_v48 = vld [vmem:[%s2594_s28 + $0x30] sm:$0xff] }
  0x4e   : > { %2110 = vmatmul.mubr.msk.f32.gmra.mxu1 %vm596_vm1, %v582_v21  ;;  %2088 = vmatprep.mubr.msk.f32.mxu0 %vm596_vm1, %v567_v22  ;;  %v1907_v49 = vld [vmem:[%s2594_s28 + $0x38] sm:$0xff]  ;;  %v1908_v50 = vld [vmem:[%s2594_s28 + $0x40] sm:$0xff]  ;;  %v1909_v51 = vld [vmem:[%s2594_s28 + $0x48] sm:$0xff] }
  0x4f   : > { %2112 = vmatprep.mubr.msk.f32.mxu1 %vm596_vm1, %v583_v23  ;;  %2182 = vmatpush3.msra.mxu0 %v1934_v19  ;;  %v1910_v52 = vld [vmem:[%s2594_s28 + $0x50] sm:$0xff]  ;;  %v1911_v53 = vld [vmem:[%s2594_s28 + $0x58] sm:$0xff]  ;;  %v1912_v54 = vld [vmem:[%s2594_s28 + $0x60] sm:$0xff] }
  0x50   : > { %v1913_v55 = vld [vmem:[%s2594_s28 + $0x68] sm:$0xff]  ;;  %v1914_v56 = vld [vmem:[%s2594_s28 + $0x70] sm:$0xff]  ;;  %v1915_v57 = vld [vmem:[%s2594_s28 + $0x78] sm:$0xff] }
  0x51   : > { %2089 = vmatmul.mubr.msk.f32.gmra.mxu0 %vm596_vm1, %v568_v24  ;;  %v1916_v58 = vld [vmem:[%s2594_s28 + $0x80] sm:$0xff]  ;;  %v1917_v59 = vld [vmem:[%s2594_s28 + $0x88] sm:$0xff]  ;;  %v1918_v60 = vld [vmem:[%s2594_s28 + $0x90] sm:$0xff] }
  0x52   : > { %2113 = vmatmul.mubr.msk.f32.gmra.mxu1 %vm596_vm1, %v584_v25  ;;  %2091 = vmatprep.mubr.msk.f32.mxu0 %vm596_vm1, %v569_v26  ;;  %v1919_v61 = vld [vmem:[%s2594_s28 + $0x98] sm:$0xff]  ;;  %v1920_v62 = vld [vmem:[%s2594_s28 + $0xa0] sm:$0xff]  ;;  %v1921_v63 = vld [vmem:[%s2594_s28 + $0xa8] sm:$0xff] }
  0x53   : > { %2115 = vmatprep.mubr.msk.f32.mxu1 %vm596_vm1, %v585_v27  ;;  %v1922_v0 = vld [vmem:[%s2594_s28 + $0xb0] sm:$0xff]  ;;  %v1923_v1 = vld [vmem:[%s2594_s28 + $0xb8] sm:$0xff]  ;;  %v1924_v2 = vld [vmem:[%s2594_s28 + $0xc0] sm:$0xff] }
  0x54   : > { %v1925_v3 = vld [vmem:[%s2594_s28 + $0xc8] sm:$0xff]  ;;  %v1926_v4 = vld [vmem:[%s2594_s28 + $0xd0] sm:$0xff]  ;;  %v1927_v5 = vld [vmem:[%s2594_s28 + $0xd8] sm:$0xff] }
  0x55   : > { %2092 = vmatmul.mubr.msk.f32.gmra.mxu0 %vm596_vm1, %v570_v28  ;;  %v1928_v6 = vld [vmem:[%s2594_s28 + $0xe0] sm:$0xff]  ;;  %v1929_v7 = vld [vmem:[%s2594_s28 + $0xe8] sm:$0xff]  ;;  %v1930_v8 = vld [vmem:[%s2594_s28 + $0xf0] sm:$0xff] }
  0x56   : > { %2116 = vmatmul.mubr.msk.f32.gmra.mxu1 %vm596_vm1, %v586_v29  ;;  %2094 = vmatprep.mubr.msk.f32.mxu0 %vm596_vm1, %v571_v30  ;;  %v1931_v9 = vld [vmem:[%s2594_s28 + $0xf8] sm:$0xff]  ;;  %v1932_v10 = vld [vmem:[%s2594_s28 + $0x100] sm:$0xff]  ;;  %v1933_v11 = vld [vmem:[%s2594_s28 + $0x108] sm:$0xff] }
  0x57   : > { %2118 = vmatprep.mubr.msk.f32.mxu1 %vm596_vm1, %v587_v31 }
  0x59   : > { %2095 = vmatmul.mubr.msk.f32.gmra.mxu0 %vm596_vm1, %v572_v32 }
  0x5a   : > { %2119 = vmatmul.mubr.msk.f32.gmra.mxu1 %vm596_vm1, %v588_v33  ;;  %2097 = vmatprep.mubr.msk.f32.mxu0 %vm596_vm1, %v573_v34 }
  0x5b   : > { %2121 = vmatprep.mubr.msk.f32.mxu1 %vm596_vm1, %v589_v35 }
  0x5d   : > { %2098 = vmatmul.mubr.msk.f32.gmra.mxu0 %vm596_vm1, %v574_v36 }
  0x5e   : > { %2122 = vmatmul.mubr.msk.f32.gmra.mxu1 %vm596_vm1, %v590_v37  ;;  %2100 = vmatprep.mubr.msk.f32.mxu0 %vm596_vm1, %v575_v38 }
  0x5f   : > { %2124 = vmatprep.mubr.msk.f32.mxu1 %vm596_vm1, %v591_v39 }
  0x61   : > { %2101 = vmatmul.mubr.msk.f32.gmra.mxu0 %vm596_vm1, %v576_v40 }
  0x62   : > { %2125 = vmatmul.mubr.msk.f32.gmra.mxu1 %vm596_vm1, %v592_v41  ;;  %2183 = vmatprep.mubr.msk.f32.mxu0 %vm596_vm1, %v1902_v42 }
  0x63   : > { %2131 = vmatprep.mubr.msk.f32.mxu1 %vm596_vm1, %v527_v43 }
  0x65   : > { %2184 = vmatmul.mubr.msk.f32.vlgmr.msra.gmra.mxu0 %vm596_vm1, %v1903_v44 }
  0x66   : > { %2132 = vmatmul.mubr.msk.f32.vlgmr.msra.gmra.mxu1 %vm596_vm1, %v528_v45  ;;  %2186 = vmatprep.mubr.msk.f32.mxu0 %vm596_vm1, %v1904_v46 }
  0x67   : > { %2134 = vmatprep.mubr.msk.f32.mxu1 %vm596_vm1, %v1902_v42 }
  0x69   : > { %2187 = vmatmul.mubr.msk.f32.gmra.mxu0 %vm596_vm1, %v1905_v47 }
  0x6a   : > { %2135 = vmatmul.mubr.msk.f32.gmra.mxu1 %vm596_vm1, %v1903_v44  ;;  %2189 = vmatprep.mubr.msk.f32.mxu0 %vm596_vm1, %v1906_v48 }
  0x6b   : > { %2137 = vmatprep.mubr.msk.f32.mxu1 %vm596_vm1, %v1904_v46 }
  0x6d   : > { %2190 = vmatmul.mubr.msk.f32.gmra.mxu0 %vm596_vm1, %v1907_v49 }
  0x6e   : > { %2138 = vmatmul.mubr.msk.f32.gmra.mxu1 %vm596_vm1, %v1905_v47  ;;  %2192 = vmatprep.mubr.msk.f32.mxu0 %vm596_vm1, %v1908_v50 }
  0x6f   : > { %2140 = vmatprep.mubr.msk.f32.mxu1 %vm596_vm1, %v1906_v48 }
  0x71   : > { %2193 = vmatmul.mubr.msk.f32.gmra.mxu0 %vm596_vm1, %v1909_v51 }
  0x72   : > { %2141 = vmatmul.mubr.msk.f32.gmra.mxu1 %vm596_vm1, %v1907_v49  ;;  %2195 = vmatprep.mubr.msk.f32.mxu0 %vm596_vm1, %v1910_v52 }
  0x73   : > { %2143 = vmatprep.mubr.msk.f32.mxu1 %vm596_vm1, %v1908_v50 }
  0x75   : > { %2196 = vmatmul.mubr.msk.f32.gmra.mxu0 %vm596_vm1, %v1911_v53 }
  0x76   : > { %2144 = vmatmul.mubr.msk.f32.gmra.mxu1 %vm596_vm1, %v1909_v51  ;;  %2198 = vmatprep.mubr.msk.f32.mxu0 %vm596_vm1, %v1912_v54 }
  0x77   : > { %2146 = vmatprep.mubr.msk.f32.mxu1 %vm596_vm1, %v1910_v52 }
  0x79   : > { %2199 = vmatmul.mubr.msk.f32.gmra.mxu0 %vm596_vm1, %v1913_v55 }
  0x7a   : > { %2147 = vmatmul.mubr.msk.f32.gmra.mxu1 %vm596_vm1, %v1911_v53  ;;  %2201 = vmatprep.mubr.msk.f32.mxu0 %vm596_vm1, %v1914_v56 }
  0x7b   : > { %2149 = vmatprep.mubr.msk.f32.mxu1 %vm596_vm1, %v1912_v54 }
  0x7d   : > { %2202 = vmatmul.mubr.msk.f32.gmra.mxu0 %vm596_vm1, %v1915_v57 }
  0x7e   : > { %2150 = vmatmul.mubr.msk.f32.gmra.mxu1 %vm596_vm1, %v1913_v55  ;;  %2204 = vmatprep.mubr.msk.f32.mxu0 %vm596_vm1, %v1916_v58 }
  0x7f   : > { %2152 = vmatprep.mubr.msk.f32.mxu1 %vm596_vm1, %v1914_v56 }
  0x81   : > { %2205 = vmatmul.mubr.msk.f32.gmra.mxu0 %vm596_vm1, %v1917_v59 }
  0x82   : > { %2153 = vmatmul.mubr.msk.f32.gmra.mxu1 %vm596_vm1, %v1915_v57  ;;  %2207 = vmatprep.mubr.msk.f32.mxu0 %vm596_vm1, %v1918_v60 }
  0x83   : > { %2155 = vmatprep.mubr.msk.f32.mxu1 %vm596_vm1, %v1916_v58 }
  0x85   : > { %2208 = vmatmul.mubr.msk.f32.gmra.mxu0 %vm596_vm1, %v1919_v61 }
  0x86   : > { %2156 = vmatmul.mubr.msk.f32.gmra.mxu1 %vm596_vm1, %v1917_v59  ;;  %2210 = vmatprep.mubr.msk.f32.mxu0 %vm596_vm1, %v1920_v62 }
  0x87   : > { %2158 = vmatprep.mubr.msk.f32.mxu1 %vm596_vm1, %v1918_v60 }
  0x89   : > { %2211 = vmatmul.mubr.msk.f32.gmra.mxu0 %vm596_vm1, %v1921_v63 }
  0x8a   : > { %2159 = vmatmul.mubr.msk.f32.gmra.mxu1 %vm596_vm1, %v1919_v61  ;;  %2213 = vmatprep.mubr.msk.f32.mxu0 %vm596_vm1, %v1922_v0 }
  0x8b   : > { %2161 = vmatprep.mubr.msk.f32.mxu1 %vm596_vm1, %v1920_v62 }
  0x8d   : > { %2214 = vmatmul.mubr.msk.f32.gmra.mxu0 %vm596_vm1, %v1923_v1 }
  0x8e   : > { %2162 = vmatmul.mubr.msk.f32.gmra.mxu1 %vm596_vm1, %v1921_v63  ;;  %2216 = vmatprep.mubr.msk.f32.mxu0 %vm596_vm1, %v1924_v2 }
  0x8f   : > { %2164 = vmatprep.mubr.msk.f32.mxu1 %vm596_vm1, %v1922_v0 }
  0x91   : > { %2217 = vmatmul.mubr.msk.f32.gmra.mxu0 %vm596_vm1, %v1925_v3 }
  0x92   : > { %2165 = vmatmul.mubr.msk.f32.gmra.mxu1 %vm596_vm1, %v1923_v1  ;;  %2219 = vmatprep.mubr.msk.f32.mxu0 %vm596_vm1, %v1926_v4 }
  0x93   : > { %2167 = vmatprep.mubr.msk.f32.mxu1 %vm596_vm1, %v1924_v2 }
  0x95   : > { %2220 = vmatmul.mubr.msk.f32.gmra.mxu0 %vm596_vm1, %v1927_v5 }
  0x96   : > { %2168 = vmatmul.mubr.msk.f32.gmra.mxu1 %vm596_vm1, %v1925_v3  ;;  %2222 = vmatprep.mubr.msk.f32.mxu0 %vm596_vm1, %v1928_v6 }
  0x97   : > { %2170 = vmatprep.mubr.msk.f32.mxu1 %vm596_vm1, %v1926_v4 }
  0x99   : > { %2223 = vmatmul.mubr.msk.f32.gmra.mxu0 %vm596_vm1, %v1929_v7 }
  0x9a   : > { %2171 = vmatmul.mubr.msk.f32.gmra.mxu1 %vm596_vm1, %v1927_v5  ;;  %2225 = vmatprep.mubr.msk.f32.mxu0 %vm596_vm1, %v1930_v8 }
  0x9b   : > { %2173 = vmatprep.mubr.msk.f32.mxu1 %vm596_vm1, %v1928_v6 }
  0x9d   : > { %2226 = vmatmul.mubr.msk.f32.gmra.mxu0 %vm596_vm1, %v1931_v9 }
  0x9e   : > { %2174 = vmatmul.mubr.msk.f32.gmra.mxu1 %vm596_vm1, %v1929_v7  ;;  %2228 = vmatprep.mubr.msk.f32.mxu0 %vm596_vm1, %v1932_v10 }
  0x9f   : > { %2176 = vmatprep.mubr.msk.f32.mxu1 %vm596_vm1, %v1930_v8 }
  0xa1   : > { %2229 = vmatmul.mubr.msk.f32.gmra.mxu0 %vm596_vm1, %v1933_v11 }
  0xa2   : > { %2177 = vmatmul.mubr.msk.f32.gmra.mxu1 %vm596_vm1, %v1931_v9 }
 0x105   : > { %v2081_v12 = vpop.f32.mrf.mxu0 }
 0x106   : > { %v2696_v13 = vpop.f32.mrf.mxu1 }
 0x107   : > { %v763_v14 = vpop.f32.mrf.mxu0 }
 0x108   : > { %v2698_v15 = vpop.f32.mrf.mxu1 }
 0x109   : > { %v2084_v16 = vpop.f32.mrf.mxu0 }
 0x10a   : > { %v2700_v17 = vpop.f32.mrf.mxu1 }
 0x10b   : > { %v773_v18 = vpop.f32.mrf.mxu0 }
 0x10c   : > { %v2702_v19 = vpop.f32.mrf.mxu1 }
 0x10d   : > { %v2087_v20 = vpop.f32.mrf.mxu0 }
 0x10e   : > { %v2704_v21 = vpop.f32.mrf.mxu1 }
 0x10f   : > { %v783_v22 = vpop.f32.mrf.mxu0 }
 0x110   : > { %v2706_v23 = vpop.f32.mrf.mxu1 }
 0x111   : > { %v2090_v24 = vpop.f32.mrf.mxu0 }
 0x112   : > { %v2708_v25 = vpop.f32.mrf.mxu1 }
 0x113   : > { %v793_v26 = vpop.f32.mrf.mxu0 }
 0x114   : > { %v2710_v27 = vpop.f32.mrf.mxu1 }
 0x115   : > { %v2712_v28 = vpop.f32.mrf.mxu0 }
 0x116   : > { %v2714_v29 = vpop.f32.mrf.mxu1 }
 0x117   : > { %v2716_v30 = vpop.f32.mrf.mxu0 }
 0x118   : > { %v2718_v31 = vpop.f32.mrf.mxu1 }
 0x119   : > { %v2720_v32 = vpop.f32.mrf.mxu0 }
 0x11a   : > { %v2722_v33 = vpop.f32.mrf.mxu1 }
 0x11b   : > { %v2724_v34 = vpop.f32.mrf.mxu0 }
 0x11c   : > { %v2726_v35 = vpop.f32.mrf.mxu1 }
 0x11d   : > { %v2728_v36 = vpop.f32.mrf.mxu0 }
 0x11e   : > { %v2730_v37 = vpop.f32.mrf.mxu1 }
 0x11f   : > { %v2732_v38 = vpop.f32.mrf.mxu0 }
 0x120   : > { %v2734_v39 = vpop.f32.mrf.mxu1 }
 0x121   : > { %v2736_v40 = vpop.f32.mrf.mxu0 }
 0x122   : > { %v2738_v41 = vpop.f32.mrf.mxu1 }
 0x123   : > { %v2740_v42 = vpop.f32.mrf.mxu0 }
 0x124   : > { %v2742_v43 = vpop.f32.mrf.mxu1 }
 0x125   : > { %v2185_v44 = vpop.f32.mrf.mxu0 }
 0x126   : > { %v2133_v45 = vpop.f32.mrf.mxu1 }
 0x127   : > { %v1093_v46 = vadd.f32 %v2133_v45, %v2081_v12  ;;  %v1447_v47 = vpop.f32.mrf.mxu0 }
 0x128   : > { %v1087_v48 = vpop.f32.mrf.mxu1 }
 0x129   : > { %v1088_v49 = vadd.f32 %v1087_v48, %v763_v14  ;;  %v2188_v50 = vpop.f32.mrf.mxu0  ;;  %v1607_v51 = vadd.f32 %v2185_v44, %v1093_v46 }
 0x12a   : > { %v2136_v52 = vpop.f32.mrf.mxu1 }
 0x12b   : > { %v1606_v53 = vadd.f32 %v1447_v47, %v1088_v49  ;;  %v1103_v54 = vadd.f32 %v2136_v52, %v2084_v16  ;;  %v1457_v55 = vpop.f32.mrf.mxu0  ;;  %v1676_v60 = vmul.f32 %v1607_v51, %v1607_v51 }
 0x12c   : > { %v1097_v56 = vpop.f32.mrf.mxu1 }
 0x12d   : > { %v1675_v57 = vmul.f32 %v1606_v53, %v1606_v53  ;;  %v1098_v58 = vadd.f32 %v1097_v56, %v773_v18  ;;  %v2191_v59 = vpop.f32.mrf.mxu0  ;;  %v1638_v62 = vadd.f32 %v1607_v51, %v1606_v53  ;;  %v1609_v63 = vadd.f32 %v2188_v50, %v1103_v54 }
 0x12e   : > { %v2139_v61 = vpop.f32.mrf.mxu1 }
 0x12f   : > { %v1608_v0 = vadd.f32 %v1457_v55, %v1098_v58  ;;  %v1113_v1 = vadd.f32 %v2139_v61, %v2087_v20  ;;  %v1467_v2 = vpop.f32.mrf.mxu0  ;;  %v1707_v4 = vadd.f32 %v1676_v60, %v1675_v57  ;;  %v1678_v11 = vmul.f32 %v1609_v63, %v1609_v63 }
 0x130   : > { %v1107_v3 = vpop.f32.mrf.mxu1 }
 0x131   : > { %v1639_v5 = vadd.f32 %v1638_v62, %v1608_v0  ;;  %v1677_v6 = vmul.f32 %v1608_v0, %v1608_v0  ;;  %v1108_v7 = vadd.f32 %v1107_v3, %v783_v22  ;;  %v2194_v8 = vpop.f32.mrf.mxu0  ;;  %v1611_v9 = vadd.f32 %v2191_v59, %v1113_v1 }
 0x132   : > { %v2142_v10 = vpop.f32.mrf.mxu1 }
 0x133   : > { %v1708_v12 = vadd.f32 %v1707_v4, %v1677_v6  ;;  %v1610_v14 = vadd.f32 %v1467_v2, %v1108_v7  ;;  %v1640_v16 = vadd.f32 %v1639_v5, %v1609_v63  ;;  %v1477_v18 = vpop.f32.mrf.mxu0  ;;  %v1123_v44 = vadd.f32 %v2142_v10, %v2090_v24 }
 0x134   : > { %v1117_v45 = vpop.f32.mrf.mxu1  ;;  %v1680_v50 = vmul.f32 %v1611_v9, %v1611_v9 }
 0x135   : > { %v1641_v46 = vadd.f32 %v1640_v16, %v1610_v14  ;;  %v1679_v47 = vmul.f32 %v1610_v14, %v1610_v14  ;;  %v1709_v48 = vadd.f32 %v1708_v12, %v1678_v11  ;;  %v1118_v20 = vadd.f32 %v1117_v45, %v793_v26  ;;  %v2197_v49 = vpop.f32.mrf.mxu0 }
 0x136   : > { %v1613_v51 = vadd.f32 %v2194_v8, %v1123_v44  ;;  %v2145_v52 = vpop.f32.mrf.mxu1 }
 0x137   : > { %v1710_v53 = vadd.f32 %v1709_v48, %v1679_v47  ;;  %v1612_v22 = vadd.f32 %v1477_v18, %v1118_v20  ;;  %v1642_v54 = vadd.f32 %v1641_v46, %v1611_v9  ;;  %v1133_v55 = vadd.f32 %v2145_v52, %v2712_v28  ;;  %v1487_v56 = vpop.f32.mrf.mxu0 }
 0x138   : > { %v1127_v57 = vpop.f32.mrf.mxu1  ;;  %v1682_v63 = vmul.f32 %v1613_v51, %v1613_v51 }
 0x139   : > { %v1643_v58 = vadd.f32 %v1642_v54, %v1612_v22  ;;  %v1681_v59 = vmul.f32 %v1612_v22, %v1612_v22  ;;  %v1711_v60 = vadd.f32 %v1710_v53, %v1680_v50  ;;  %v2200_v24 = vpop.f32.mrf.mxu0  ;;  %v1128_v61 = vadd.f32 %v1127_v57, %v2716_v30 }
 0x13a   : > { %v2148_v62 = vpop.f32.mrf.mxu1  ;;  %v1615_v0 = vadd.f32 %v2197_v49, %v1133_v55 }
 0x13b   : > { %v1712_v26 = vadd.f32 %v1711_v60, %v1681_v59  ;;  %v1644_v1 = vadd.f32 %v1643_v58, %v1613_v51  ;;  %v1497_v2 = vpop.f32.mrf.mxu0  ;;  %v1614_v3 = vadd.f32 %v1487_v56, %v1128_v61  ;;  %v1143_v4 = vadd.f32 %v2148_v62, %v2720_v32 }
 0x13c   : > { %v1137_v5 = vpop.f32.mrf.mxu1  ;;  %v1684_v11 = vmul.f32 %v1615_v0, %v1615_v0 }
 0x13d   : > { %v1713_v6 = vadd.f32 %v1712_v26, %v1682_v63  ;;  %v1138_v28 = vadd.f32 %v1137_v5, %v2724_v34  ;;  %v2203_v7 = vpop.f32.mrf.mxu0  ;;  %v1645_v8 = vadd.f32 %v1644_v1, %v1614_v3  ;;  %v1683_v9 = vmul.f32 %v1614_v3, %v1614_v3 }
 0x13e   : > { %v2151_v10 = vpop.f32.mrf.mxu1  ;;  %v1617_v16 = vadd.f32 %v2200_v24, %v1143_v4 }
 0x13f   : > { %v1616_v12 = vadd.f32 %v1497_v2, %v1138_v28  ;;  %v1507_v30 = vpop.f32.mrf.mxu0  ;;  %v1714_v14 = vadd.f32 %v1713_v6, %v1683_v9  ;;  %v1646_v18 = vadd.f32 %v1645_v8, %v1615_v0  ;;  %v1153_v44 = vadd.f32 %v2151_v10, %v2728_v36 }
 0x140   : > { %v1147_v45 = vpop.f32.mrf.mxu1  ;;  %v1686_v52 = vmul.f32 %v1617_v16, %v1617_v16 }
 0x141   : > { %v1685_v46 = vmul.f32 %v1616_v12, %v1616_v12  ;;  %v1148_v32 = vadd.f32 %v1147_v45, %v2732_v38  ;;  %v2206_v47 = vpop.f32.mrf.mxu0  ;;  %v1647_v48 = vadd.f32 %v1646_v18, %v1616_v12  ;;  %v1715_v20 = vadd.f32 %v1714_v14, %v1684_v11 }
 0x142   : > { %v2154_v34 = vpop.f32.mrf.mxu1  ;;  %v1619_v22 = vadd.f32 %v2203_v7, %v1153_v44 }
 0x143   : > { %v1618_v49 = vadd.f32 %v1507_v30, %v1148_v32  ;;  %v1163_v50 = vadd.f32 %v2154_v34, %v2736_v40  ;;  %v1517_v51 = vpop.f32.mrf.mxu0  ;;  %v1716_v53 = vadd.f32 %v1715_v20, %v1685_v46  ;;  %v1648_v54 = vadd.f32 %v1647_v48, %v1617_v16 }
 0x144   : > { %v1157_v55 = vpop.f32.mrf.mxu1  ;;  %v1688_v62 = vmul.f32 %v1619_v22, %v1619_v22 }
 0x145   : > { %v1687_v56 = vmul.f32 %v1618_v49, %v1618_v49  ;;  %v1158_v36 = vadd.f32 %v1157_v55, %v2740_v42  ;;  %v2209_v57 = vpop.f32.mrf.mxu0  ;;  %v1649_v58 = vadd.f32 %v1648_v54, %v1618_v49  ;;  %v1717_v59 = vadd.f32 %v1716_v53, %v1686_v52 }
 0x146   : > { %v2157_v38 = vpop.f32.mrf.mxu1  ;;  %v1621_v60 = vadd.f32 %v2206_v47, %v1163_v50 }
 0x147   : > { %v1620_v24 = vadd.f32 %v1517_v51, %v1158_v36  ;;  %v1527_v61 = vpop.f32.mrf.mxu0  ;;  %v1718_v63 = vadd.f32 %v1717_v59, %v1687_v56  ;;  %v1650_v26 = vadd.f32 %v1649_v58, %v1619_v22  ;;  %v1173_v40 = vadd.f32 %v2157_v38, %v2696_v13 }
 0x148   : > { %v1167_v0 = vpop.f32.mrf.mxu1  ;;  %v1690_v6 = vmul.f32 %v1621_v60, %v1621_v60 }
 0x149   : > { %v1689_v1 = vmul.f32 %v1620_v24, %v1620_v24  ;;  %v1168_v2 = vadd.f32 %v1167_v0, %v2698_v15  ;;  %v2212_v3 = vpop.f32.mrf.mxu0  ;;  %v1651_v4 = vadd.f32 %v1650_v26, %v1620_v24  ;;  %v1719_v5 = vadd.f32 %v1718_v63, %v1688_v62 }
 0x14a   : > { %v2160_v42 = vpop.f32.mrf.mxu1  ;;  %v1623_v9 = vadd.f32 %v2209_v57, %v1173_v40 }
 0x14b   : > { %v1622_v28 = vadd.f32 %v1527_v61, %v1168_v2  ;;  %v1537_v7 = vpop.f32.mrf.mxu0  ;;  %v1720_v8 = vadd.f32 %v1719_v5, %v1689_v1  ;;  %v1652_v10 = vadd.f32 %v1651_v4, %v1621_v60  ;;  %v1183_v11 = vadd.f32 %v2160_v42, %v2700_v17 }
 0x14c   : > { %v1177_v12 = vpop.f32.mrf.mxu1  ;;  %v1692_v32 = vmul.f32 %v1623_v9, %v1623_v9 }
 0x14d   : > { %v1691_v30 = vmul.f32 %v1622_v28, %v1622_v28  ;;  %v1178_v13 = vadd.f32 %v1177_v12, %v2702_v19  ;;  %v2215_v14 = vpop.f32.mrf.mxu0  ;;  %v1653_v16 = vadd.f32 %v1652_v10, %v1622_v28  ;;  %v1721_v18 = vadd.f32 %v1720_v8, %v1690_v6 }
 0x14e   : > { %v2163_v15 = vpop.f32.mrf.mxu1  ;;  %v1625_v48 = vadd.f32 %v2212_v3, %v1183_v11 }
 0x14f   : > { %v1624_v44 = vadd.f32 %v1537_v7, %v1178_v13  ;;  %v1193_v45 = vadd.f32 %v2163_v15, %v2704_v21  ;;  %v1547_v46 = vpop.f32.mrf.mxu0  ;;  %v1722_v47 = vadd.f32 %v1721_v18, %v1691_v30  ;;  %v1654_v20 = vadd.f32 %v1653_v16, %v1623_v9 }
 0x150   : > { %v1187_v34 = vpop.f32.mrf.mxu1  ;;  %v1694_v55 = vmul.f32 %v1625_v48, %v1625_v48 }
 0x151   : > { %v1693_v49 = vmul.f32 %v1624_v44, %v1624_v44  ;;  %v1188_v17 = vadd.f32 %v1187_v34, %v2706_v23  ;;  %v2218_v50 = vpop.f32.mrf.mxu0  ;;  %v1655_v51 = vadd.f32 %v1654_v20, %v1624_v44  ;;  %v1723_v52 = vadd.f32 %v1722_v47, %v1692_v32 }
 0x152   : > { %v2166_v19 = vpop.f32.mrf.mxu1  ;;  %v1627_v53 = vadd.f32 %v2215_v14, %v1193_v45 }
 0x153   : > { %v1626_v22 = vadd.f32 %v1547_v46, %v1188_v17  ;;  %v1557_v54 = vpop.f32.mrf.mxu0  ;;  %v1724_v56 = vadd.f32 %v1723_v52, %v1693_v49  ;;  %v1656_v36 = vadd.f32 %v1655_v51, %v1625_v48  ;;  %v1203_v21 = vadd.f32 %v2166_v19, %v2708_v25 }
 0x154   : > { %v1197_v57 = vpop.f32.mrf.mxu1  ;;  %v1696_v61 = vmul.f32 %v1627_v53, %v1627_v53 }
 0x155   : > { %v1695_v58 = vmul.f32 %v1626_v22, %v1626_v22  ;;  %v1198_v59 = vadd.f32 %v1197_v57, %v2710_v27  ;;  %v2221_v38 = vpop.f32.mrf.mxu0  ;;  %v1657_v60 = vadd.f32 %v1656_v36, %v1626_v22  ;;  %v1725_v24 = vadd.f32 %v1724_v56, %v1694_v55 }
 0x156   : > { %v2169_v23 = vpop.f32.mrf.mxu1  ;;  %v1629_v40 = vadd.f32 %v2218_v50, %v1203_v21 }
 0x157   : > { %v1628_v62 = vadd.f32 %v1557_v54, %v1198_v59  ;;  %v1567_v63 = vpop.f32.mrf.mxu0  ;;  %v1726_v26 = vadd.f32 %v1725_v24, %v1695_v58  ;;  %v1658_v0 = vadd.f32 %v1657_v60, %v1627_v53  ;;  %v1213_v1 = vadd.f32 %v2169_v23, %v2714_v29 }
 0x158   : > { %v1207_v2 = vpop.f32.mrf.mxu1  ;;  %v1698_v8 = vmul.f32 %v1629_v40, %v1629_v40 }
 0x159   : > { %v1697_v3 = vmul.f32 %v1628_v62, %v1628_v62  ;;  %v1208_v25 = vadd.f32 %v1207_v2, %v2718_v31  ;;  %v2224_v4 = vpop.f32.mrf.mxu0  ;;  %v1659_v5 = vadd.f32 %v1658_v0, %v1628_v62  ;;  %v1727_v42 = vadd.f32 %v1726_v26, %v1696_v61 }
 0x15a   : > { %v2172_v27 = vpop.f32.mrf.mxu1  ;;  %v1631_v10 = vadd.f32 %v2221_v38, %v1213_v1 }
 0x15b   : > { %v1630_v6 = vadd.f32 %v1567_v63, %v1208_v25  ;;  %v1223_v28 = vadd.f32 %v2172_v27, %v2722_v33  ;;  %v1577_v7 = vpop.f32.mrf.mxu0  ;;  %v1728_v9 = vadd.f32 %v1727_v42, %v1697_v3  ;;  %v1660_v11 = vadd.f32 %v1659_v5, %v1629_v40 }
 0x15c   : > { %v1217_v12 = vpop.f32.mrf.mxu1  ;;  %v1700_v45 = vmul.f32 %v1631_v10, %v1631_v10 }
 0x15d   : > { %v1699_v30 = vmul.f32 %v1630_v6, %v1630_v6  ;;  %v1218_v29 = vadd.f32 %v1217_v12, %v2726_v35  ;;  %v2227_v13 = vpop.f32.mrf.mxu0  ;;  %v1661_v14 = vadd.f32 %v1660_v11, %v1630_v6  ;;  %v1729_v16 = vadd.f32 %v1728_v9, %v1698_v8 }
 0x15e   : > { %v2175_v31 = vpop.f32.mrf.mxu1  ;;  %v1633_v18 = vadd.f32 %v2224_v4, %v1223_v28 }
 0x15f   : > { %v1632_v15 = vadd.f32 %v1577_v7, %v1218_v29  ;;  %v1587_v44 = vpop.f32.mrf.mxu0  ;;  %v1730_v46 = vadd.f32 %v1729_v16, %v1699_v30  ;;  %v1662_v32 = vadd.f32 %v1661_v14, %v1631_v10  ;;  %v1233_v33 = vadd.f32 %v2175_v31, %v2730_v37 }
 0x160   : > { %v1227_v47 = vpop.f32.mrf.mxu1  ;;  %v1702_v50 = vmul.f32 %v1633_v18, %v1633_v18 }
 0x161   : > { %v1701_v48 = vmul.f32 %v1632_v15, %v1632_v15  ;;  %v1228_v20 = vadd.f32 %v1227_v47, %v2734_v39  ;;  %v1663_v34 = vadd.f32 %v1662_v32, %v1632_v15  ;;  %v1731_v49 = vadd.f32 %v1730_v46, %v1700_v45  ;;  %v2230_v35 = vpop.f32.mrf.mxu0 }
 0x162   : > { %v2178_v17 = vpop.f32.mrf.mxu1  ;;  %v1635_v19 = vadd.f32 %v2227_v13, %v1233_v33 }
 0x163   : > { %v1634_v51 = vadd.f32 %v1587_v44, %v1228_v20  ;;  %v1732_v52 = vadd.f32 %v1731_v49, %v1701_v48  ;;  %v1664_v53 = vadd.f32 %v1663_v34, %v1633_v18  ;;  %v1243_v22 = vadd.f32 %v2178_v17, %v2738_v41  ;;  %v1597_v21 = vpop.f32.mrf.mxu0 }
 0x164   : > { %v1237_v54 = vpop.f32.mrf.mxu1  ;;  %v1704_v57 = vmul.f32 %v1635_v19, %v1635_v19 }
 0x165   : > { %v1703_v55 = vmul.f32 %v1634_v51, %v1634_v51  ;;  %v1238_v56 = vadd.f32 %v1237_v54, %v2742_v43  ;;  %v1665_v37 = vadd.f32 %v1664_v53, %v1634_v51  ;;  %v1733_v36 = vadd.f32 %v1732_v52, %v1702_v50 }
 0x166   : > { %v1637_v59 = vadd.f32 %v2230_v35, %v1243_v22 }
 0x167   : > { %v1636_v39 = vadd.f32 %v1597_v21, %v1238_v56  ;;  %v1734_v58 = vadd.f32 %v1733_v36, %v1703_v55  ;;  %v1666_v38 = vadd.f32 %v1665_v37, %v1635_v19 }
 0x168   : > { %v1706_v61 = vmul.f32 %v1637_v59, %v1637_v59 }
 0x169   : > { %v1705_v60 = vmul.f32 %v1636_v39, %v1636_v39  ;;  %v1667_v24 = vadd.f32 %v1666_v38, %v1636_v39  ;;  %v1735_v23 = vadd.f32 %v1734_v58, %v1704_v57 }
 0x16b   : > { %v1668_v62 = vadd.f32 %v1667_v24, %v1637_v59  ;;  %v1736_v41 = vadd.f32 %v1735_v23, %v1705_v60 }
 0x16d   : > { %v1669_v63 = vrot.slane %v1668_v62, 4  ;;  %v1737_v26 = vadd.f32 %v1736_v41, %v1706_v61 }
 0x16f   : > { %v1670_v43 = vadd.f32 %v1669_v63, %v1668_v62  ;;  %v1738_v40 = vrot.slane %v1737_v26, 4 }
 0x171   : > { %v1671_v0 = vrot.slane %v1670_v43, 2  ;;  %v1739_v1 = vadd.f32 %v1738_v40, %v1737_v26 }
 0x173   : > { %v1672_v2 = vadd.f32 %v1671_v0, %v1670_v43  ;;  %v1740_v3 = vrot.slane %v1739_v1, 2 }
 0x175   : > { %v1673_v25 = vrot.slane %v1672_v2, 1  ;;  %v1741_v4 = vadd.f32 %v1740_v3, %v1739_v1 }
 0x177   : > { %v1742_v5 = vrot.slane %v1741_v4, 1  ;;  %v1674_v42 = vadd.f32 %v1673_v25, %v1672_v2 }
 0x179   : > { %v1743_v27 = vadd.f32 %v1742_v5, %v1741_v4 }
 0x17b   : > { %v1745_v6 = vsel %vm1744_vm2, %v1674_v42, %v1743_v27 }
 0x17c   : > { %1746 = vst [vmem:[%s526_s5] sm:$0x3] %v1745_v6 }
 0x17d PF: > { %p10_p9 = scmp.ge.s32.totalorder %s2323_s16, 4   ;;  %s2790_s12 = smov %s2280_s13 }
 0x17e   : > { %s2791_s13 = smov %s2332_s19  ;;  %s2792_s14 = smov %s2323_s16 }
 0x17f   :  { %12 = sbr.rel (!%p10_p9) target bundleno = 2 (0x2), region = 154 }

// kernel: discriminator_block.3
= control target key start
LH: loop header
LB: loop body
LE: loop exit
PB: predicated region body
PF: predicated region fallthrough
CT: control target
= control target key end

     0   :  { %s2634_s18 = smov 0   ;;  %s2636_s19 = smov 0   ;;  %s3303_s0 = inlined_call_operand.vmem [shape: f32[17,32,12], index: 0, kind: input, shape index: {}]   ;;  %s3304_s1 = inlined_call_operand.vmem [shape: f32[17,32,12], index: 1, kind: input, shape index: {}]   ;;  %s3305_s2 = inlined_call_operand.vmem [shape: f32[3,12,128], index: 2, kind: input, shape index: {}]   ;;  %s3306_s3 = inlined_call_operand.vmem [shape: f32[1,128], index: 3, kind: input, shape index: {}]   ;;  %s3307_s4 = inlined_call_operand.vmem [shape: f32[1,128], index: 4, kind: input, shape index: {}]   ;;  %s3308_s5 = inlined_call_operand.vmem [shape: f32[16,32,128], index: 5, kind: output, shape index: {}]  }
   0x1   :  { %s2638_s20 = smov 0  }
   0x2 LB: > { %s2136_s21 = sadd.s32 4294967295, %s2602_s20   ;;  %s2651_s22 = sadd.s32 1, %s2602_s20   ;;  %s2602_s20 = sphi %s2638_s20, %s3313_s20   ;;  %s2598_s19 = sphi %s2636_s19, %s3312_s19   ;;  %s2594_s18 = sphi %s2634_s18, %s3311_s18  }
   0x3   : > { %s19_s23 = ssub.s32 %s2602_s20, %s2651_s22  ;;  %s22_s24 = sadd.s32 1, %s2598_s19 }
   0x4   : > { %p20_p0 = scmp.eq.s32.totalorder %s19_s23, 0  ;;  %p29_p1 = scmp.ne.s32.totalorder %s2598_s19, %s2594_s18 }
   0x5   : > { %p30_p2 = scmp.eq.s32.totalorder %s2602_s20, 0  ;;  %p148_p3 = scmp.eq.s32.totalorder %s2136_s21, 1 }
   0x6   : > { %s2662_s25 = scalar_select %p20_p0, %s2598_s19, %s22_s24  }
   0x7   : > { %p2664_p4 = por %p30_p2, %p29_p1  ;;  %p2668_p5 = por %p148_p3, %p29_p1 }
   0x8   : > { %p2139_p6 = scmp.ge.s32.totalorder %s2602_s20, 2 }
   0xa   : > { %179 = sbr.rel (%p2139_p6) target bundleno = 57 (0x39), region = 28 }
   0xf   : > { %182 = sbr.rel (!%p2664_p4) target bundleno = 36 (0x24), region = 32  ;;  %s184_s28 = sand.u32 (%p2664_p4), 1, %s2598_s19  }
  0x10   : > { %s2288_s29 = sshll.u32 (%p2664_p4), %s2602_s20, 4  ;;  %s2553_s30 = smul.u32 (%p2664_p4), 272, %s184_s28 }
  0x11   : > { %s2680_s8 = scalar_lea.vmem (%p2664_p4), %s3303_s0, %s2288_s29 }
  0x12   : > { %v284_v0 = vld [vmem:[%s2680_s8] sm:$0xff] (%p2664_p4)  ;;  %v286_v1 = vld [vmem:[%s2680_s8 + $0x8] sm:$0xff] (%p2664_p4)  ;;  %s2688_s9 = scalar_lea.vmem (%p2664_p4), [#allocation2], %s2553_s30 }
  0x13   : > { %v288_v2 = vld [vmem:[%s2680_s8 + $0x20] sm:$0xff] (%p2664_p4)  ;;  %v290_v3 = vld [vmem:[%s2680_s8 + $0x28] sm:$0xff] (%p2664_p4)  ;;  %285 = vst [vmem:[%s2688_s9] sm:$0xff] (%p2664_p4), %v284_v0  ;;  %287 = vst [vmem:[%s2688_s9 + $0x8] sm:$0xff] (%p2664_p4), %v286_v1 }
  0x14   : > { %v292_v4 = vld [vmem:[%s2680_s8 + $0x40] sm:$0xff]  ;;  %v294_v5 = vld [vmem:[%s2680_s8 + $0x48] sm:$0xff]  ;;  %289 = vst [vmem:[%s2688_s9 + $0x10] sm:$0xff] %v288_v2  ;;  %291 = vst [vmem:[%s2688_s9 + $0x18] sm:$0xff] %v290_v3 }
  0x15   : > { %293 = vst [vmem:[%s2688_s9 + $0x20] sm:$0xff] %v292_v4  ;;  %295 = vst [vmem:[%s2688_s9 + $0x28] sm:$0xff] %v294_v5  ;;  %v296_v6 = vld [vmem:[%s2680_s8 + $0x60] sm:$0xff]  ;;  %v298_v7 = vld [vmem:[%s2680_s8 + $0x68] sm:$0xff] }
  0x16   : > { %v300_v8 = vld [vmem:[%s2680_s8 + $0x80] sm:$0xff]  ;;  %297 = vst [vmem:[%s2688_s9 + $0x30] sm:$0xff] %v296_v6  ;;  %299 = vst [vmem:[%s2688_s9 + $0x38] sm:$0xff] %v298_v7  ;;  %v302_v9 = vld [vmem:[%s2680_s8 + $0x88] sm:$0xff] }
  0x17   : > { %301 = vst [vmem:[%s2688_s9 + $0x40] sm:$0xff] %v300_v8  ;;  %v304_v10 = vld [vmem:[%s2680_s8 + $0xa0] sm:$0xff]  ;;  %v306_v11 = vld [vmem:[%s2680_s8 + $0xa8] sm:$0xff]  ;;  %303 = vst [vmem:[%s2688_s9 + $0x48] sm:$0xff] %v302_v9 }
  0x18   : > { %305 = vst [vmem:[%s2688_s9 + $0x50] sm:$0xff] %v304_v10  ;;  %307 = vst [vmem:[%s2688_s9 + $0x58] sm:$0xff] %v306_v11  ;;  %v308_v12 = vld [vmem:[%s2680_s8 + $0xc0] sm:$0xff]  ;;  %v310_v13 = vld [vmem:[%s2680_s8 + $0xc8] sm:$0xff] }
  0x19   : > { %v312_v14 = vld [vmem:[%s2680_s8 + $0xe0] sm:$0xff]  ;;  %309 = vst [vmem:[%s2688_s9 + $0x60] sm:$0xff] %v308_v12  ;;  %311 = vst [vmem:[%s2688_s9 + $0x68] sm:$0xff] %v310_v13  ;;  %v314_v15 = vld [vmem:[%s2680_s8 + $0xe8] sm:$0xff] }
  0x1a   : > { %313 = vst [vmem:[%s2688_s9 + $0x70] sm:$0xff] %v312_v14  ;;  %v316_v16 = vld [vmem:[%s2680_s8 + $0x100] sm:$0xff]  ;;  %v318_v17 = vld [vmem:[%s2680_s8 + $0x108] sm:$0xff]  ;;  %315 = vst [vmem:[%s2688_s9 + $0x78] sm:$0xff] %v314_v15 }
  0x1b   : > { %317 = vst [vmem:[%s2688_s9 + $0x80] sm:$0xff] %v316_v16  ;;  %319 = vst [vmem:[%s2688_s9 + $0x88] sm:$0xff] %v318_v17  ;;  %v320_v18 = vld [vmem:[%s2680_s8 + $0x120] sm:$0xff]  ;;  %v322_v19 = vld [vmem:[%s2680_s8 + $0x128] sm:$0xff] }
  0x1c   : > { %v324_v20 = vld [vmem:[%s2680_s8 + $0x140] sm:$0xff]  ;;  %321 = vst [vmem:[%s2688_s9 + $0x90] sm:$0xff] %v320_v18  ;;  %323 = vst [vmem:[%s2688_s9 + $0x98] sm:$0xff] %v322_v19  ;;  %v326_v21 = vld [vmem:[%s2680_s8 + $0x148] sm:$0xff] }
  0x1d   : > { %325 = vst [vmem:[%s2688_s9 + $0xa0] sm:$0xff] %v324_v20  ;;  %v328_v22 = vld [vmem:[%s2680_s8 + $0x160] sm:$0xff]  ;;  %v330_v23 = vld [vmem:[%s2680_s8 + $0x168] sm:$0xff]  ;;  %327 = vst [vmem:[%s2688_s9 + $0xa8] sm:$0xff] %v326_v21 }
  0x1e   : > { %329 = vst [vmem:[%s2688_s9 + $0xb0] sm:$0xff] %v328_v22  ;;  %331 = vst [vmem:[%s2688_s9 + $0xb8] sm:$0xff] %v330_v23  ;;  %v332_v24 = vld [vmem:[%s2680_s8 + $0x180] sm:$0xff]  ;;  %v334_v25 = vld [vmem:[%s2680_s8 + $0x188] sm:$0xff] }
  0x1f   : > { %v336_v26 = vld [vmem:[%s2680_s8 + $0x1a0] sm:$0xff]  ;;  %333 = vst [vmem:[%s2688_s9 + $0xc0] sm:$0xff] %v332_v24  ;;  %335 = vst [vmem:[%s2688_s9 + $0xc8] sm:$0xff] %v334_v25  ;;  %v338_v27 = vld [vmem:[%s2680_s8 + $0x1a8] sm:$0xff] }
  0x20   : > { %337 = vst [vmem:[%s2688_s9 + $0xd0] sm:$0xff] %v336_v26  ;;  %v340_v28 = vld [vmem:[%s2680_s8 + $0x1c0] sm:$0xff]  ;;  %v342_v29 = vld [vmem:[%s2680_s8 + $0x1c8] sm:$0xff]  ;;  %339 = vst [vmem:[%s2688_s9 + $0xd8] sm:$0xff] %v338_v27 }
  0x21   : > { %341 = vst [vmem:[%s2688_s9 + $0xe0] sm:$0xff] %v340_v28  ;;  %343 = vst [vmem:[%s2688_s9 + $0xe8] sm:$0xff] %v342_v29  ;;  %v344_v30 = vld [vmem:[%s2680_s8 + $0x1e0] sm:$0xff]  ;;  %v346_v31 = vld [vmem:[%s2680_s8 + $0x1e8] sm:$0xff] }
  0x22   : > { %v348_v32 = vld [vmem:[%s2680_s8 + $0x200] sm:$0xff]  ;;  %345 = vst [vmem:[%s2688_s9 + $0xf0] sm:$0xff] %v344_v30  ;;  %347 = vst [vmem:[%s2688_s9 + $0xf8] sm:$0xff] %v346_v31  ;;  %v350_v33 = vld [vmem:[%s2680_s8 + $0x208] sm:$0xff] }
  0x23   : > { %349 = vst [vmem:[%s2688_s9 + $0x100] sm:$0xff] %v348_v32  ;;  %351 = vst [vmem:[%s2688_s9 + $0x108] sm:$0xff] %v350_v33 }
  0x24 PF: > { %357 = sbr.rel (!%p2664_p4) target bundleno = 57 (0x39), region = 70  ;;  %s359_s10 = sand.u32 (%p2664_p4), 1, %s2598_s19  }
  0x25   : > { %s2289_s11 = sshll.u32 (%p2664_p4), %s2602_s20, 4  ;;  %s2554_s12 = smul.u32 (%p2664_p4), 272, %s359_s10 }
  0x26   : > { %s2759_s15 = scalar_lea.vmem (%p2664_p4), %s3304_s1, %s2289_s11 }
  0x27   : > { %v459_v34 = vld [vmem:[%s2759_s15] sm:$0xff] (%p2664_p4)  ;;  %v461_v35 = vld [vmem:[%s2759_s15 + $0x8] sm:$0xff] (%p2664_p4)  ;;  %s2767_s16 = scalar_lea.vmem (%p2664_p4), [#allocation3], %s2554_s12 }
  0x28   : > { %v463_v36 = vld [vmem:[%s2759_s15 + $0x20] sm:$0xff] (%p2664_p4)  ;;  %v465_v37 = vld [vmem:[%s2759_s15 + $0x28] sm:$0xff] (%p2664_p4)  ;;  %460 = vst [vmem:[%s2767_s16] sm:$0xff] (%p2664_p4), %v459_v34  ;;  %462 = vst [vmem:[%s2767_s16 + $0x8] sm:$0xff] (%p2664_p4), %v461_v35 }
  0x29   : > { %v467_v38 = vld [vmem:[%s2759_s15 + $0x40] sm:$0xff]  ;;  %v469_v39 = vld [vmem:[%s2759_s15 + $0x48] sm:$0xff]  ;;  %464 = vst [vmem:[%s2767_s16 + $0x10] sm:$0xff] %v463_v36  ;;  %466 = vst [vmem:[%s2767_s16 + $0x18] sm:$0xff] %v465_v37 }
  0x2a   : > { %468 = vst [vmem:[%s2767_s16 + $0x20] sm:$0xff] %v467_v38  ;;  %470 = vst [vmem:[%s2767_s16 + $0x28] sm:$0xff] %v469_v39  ;;  %v471_v40 = vld [vmem:[%s2759_s15 + $0x60] sm:$0xff]  ;;  %v473_v41 = vld [vmem:[%s2759_s15 + $0x68] sm:$0xff] }
  0x2b   : > { %v475_v42 = vld [vmem:[%s2759_s15 + $0x80] sm:$0xff]  ;;  %472 = vst [vmem:[%s2767_s16 + $0x30] sm:$0xff] %v471_v40  ;;  %474 = vst [vmem:[%s2767_s16 + $0x38] sm:$0xff] %v473_v41  ;;  %v477_v43 = vld [vmem:[%s2759_s15 + $0x88] sm:$0xff] }
  0x2c   : > { %476 = vst [vmem:[%s2767_s16 + $0x40] sm:$0xff] %v475_v42  ;;  %v479_v44 = vld [vmem:[%s2759_s15 + $0xa0] sm:$0xff]  ;;  %v481_v45 = vld [vmem:[%s2759_s15 + $0xa8] sm:$0xff]  ;;  %478 = vst [vmem:[%s2767_s16 + $0x48] sm:$0xff] %v477_v43 }
  0x2d   : > { %480 = vst [vmem:[%s2767_s16 + $0x50] sm:$0xff] %v479_v44  ;;  %482 = vst [vmem:[%s2767_s16 + $0x58] sm:$0xff] %v481_v45  ;;  %v483_v46 = vld [vmem:[%s2759_s15 + $0xc0] sm:$0xff]  ;;  %v485_v47 = vld [vmem:[%s2759_s15 + $0xc8] sm:$0xff] }
  0x2e   : > { %v487_v48 = vld [vmem:[%s2759_s15 + $0xe0] sm:$0xff]  ;;  %484 = vst [vmem:[%s2767_s16 + $0x60] sm:$0xff] %v483_v46  ;;  %486 = vst [vmem:[%s2767_s16 + $0x68] sm:$0xff] %v485_v47  ;;  %v489_v49 = vld [vmem:[%s2759_s15 + $0xe8] sm:$0xff] }
  0x2f   : > { %488 = vst [vmem:[%s2767_s16 + $0x70] sm:$0xff] %v487_v48  ;;  %v491_v50 = vld [vmem:[%s2759_s15 + $0x100] sm:$0xff]  ;;  %v493_v51 = vld [vmem:[%s2759_s15 + $0x108] sm:$0xff]  ;;  %490 = vst [vmem:[%s2767_s16 + $0x78] sm:$0xff] %v489_v49 }
  0x30   : > { %492 = vst [vmem:[%s2767_s16 + $0x80] sm:$0xff] %v491_v50  ;;  %494 = vst [vmem:[%s2767_s16 + $0x88] sm:$0xff] %v493_v51  ;;  %v495_v52 = vld [vmem:[%s2759_s15 + $0x120] sm:$0xff]  ;;  %v497_v53 = vld [vmem:[%s2759_s15 + $0x128] sm:$0xff] }
  0x31   : > { %v499_v54 = vld [vmem:[%s2759_s15 + $0x140] sm:$0xff]  ;;  %496 = vst [vmem:[%s2767_s16 + $0x90] sm:$0xff] %v495_v52  ;;  %498 = vst [vmem:[%s2767_s16 + $0x98] sm:$0xff] %v497_v53  ;;  %v501_v55 = vld [vmem:[%s2759_s15 + $0x148] sm:$0xff] }
  0x32   : > { %500 = vst [vmem:[%s2767_s16 + $0xa0] sm:$0xff] %v499_v54  ;;  %v503_v56 = vld [vmem:[%s2759_s15 + $0x160] sm:$0xff]  ;;  %v505_v57 = vld [vmem:[%s2759_s15 + $0x168] sm:$0xff]  ;;  %502 = vst [vmem:[%s2767_s16 + $0xa8] sm:$0xff] %v501_v55 }
  0x33   : > { %504 = vst [vmem:[%s2767_s16 + $0xb0] sm:$0xff] %v503_v56  ;;  %506 = vst [vmem:[%s2767_s16 + $0xb8] sm:$0xff] %v505_v57  ;;  %v507_v58 = vld [vmem:[%s2759_s15 + $0x180] sm:$0xff]  ;;  %v509_v59 = vld [vmem:[%s2759_s15 + $0x188] sm:$0xff] }
  0x34   : > { %v511_v60 = vld [vmem:[%s2759_s15 + $0x1a0] sm:$0xff]  ;;  %508 = vst [vmem:[%s2767_s16 + $0xc0] sm:$0xff] %v507_v58  ;;  %510 = vst [vmem:[%s2767_s16 + $0xc8] sm:$0xff] %v509_v59  ;;  %v513_v61 = vld [vmem:[%s2759_s15 + $0x1a8] sm:$0xff] }
  0x35   : > { %512 = vst [vmem:[%s2767_s16 + $0xd0] sm:$0xff] %v511_v60  ;;  %v515_v62 = vld [vmem:[%s2759_s15 + $0x1c0] sm:$0xff]  ;;  %v517_v63 = vld [vmem:[%s2759_s15 + $0x1c8] sm:$0xff]  ;;  %514 = vst [vmem:[%s2767_s16 + $0xd8] sm:$0xff] %v513_v61 }
  0x36   : > { %516 = vst [vmem:[%s2767_s16 + $0xe0] sm:$0xff] %v515_v62  ;;  %518 = vst [vmem:[%s2767_s16 + $0xe8] sm:$0xff] %v517_v63  ;;  %v519_v0 = vld [vmem:[%s2759_s15 + $0x1e0] sm:$0xff]  ;;  %v521_v1 = vld [vmem:[%s2759_s15 + $0x1e8] sm:$0xff] }
  0x37   : > { %v523_v2 = vld [vmem:[%s2759_s15 + $0x200] sm:$0xff]  ;;  %520 = vst [vmem:[%s2767_s16 + $0xf0] sm:$0xff] %v519_v0  ;;  %522 = vst [vmem:[%s2767_s16 + $0xf8] sm:$0xff] %v521_v1  ;;  %v525_v3 = vld [vmem:[%s2759_s15 + $0x208] sm:$0xff] }
  0x38   : > { %524 = vst [vmem:[%s2767_s16 + $0x100] sm:$0xff] %v523_v2  ;;  %526 = vst [vmem:[%s2767_s16 + $0x108] sm:$0xff] %v525_v3 }
  0x39 PF: > { %p2144_p7 = scmp.ge.s32.totalorder %s2602_s20, 1  ;;  %p531_p8 = scmp.lt.s32.totalorder %s2602_s20, 3 }
  0x3b   : > { %p532_p9 = pnand %p2144_p7, %p531_p8 }
  0x3c   : > { %s538_s28 = sand.u32 (!%p532_p9), 1, %s2594_s18  }
  0x3d   : > { %535 = sbr.rel (%p532_p9) target bundleno = 380 (0x17c), region = 108  ;;  %s2145_s24 = sshll.u32 (!%p532_p9), %s538_s28, 8 }
  0x3e   : > { %s2844_s29 = smul.u32 (!%p532_p9), 272, %s538_s28  ;;  %s3102_s18 = scalar_lea.vmem (!%p532_p9), [#allocation4], %s2145_s24 }
  0x40   : > { %s2855_s9 = scalar_lea.vmem (!%p532_p9), [#allocation3], %s2844_s29  ;;  %s2930_s14 = scalar_lea.vmem (!%p532_p9), [#allocation2], %s2844_s29 }
  0x42   : > { %v2147_v4 = vld [vmem:[%s3305_s2 + $0x18] sm:$0xf]  ;;  %vm744_vm0 = vcmask 1043456   ;;  %v2146_v5 = vld [vmem:[%s3305_s2 + $0x10] sm:$0xff]  ;;  %vm647_vm1 = vcmask 97280   ;;  %v610_v15 = vld [vmem:[%s3305_s2] sm:$0xff] }
  0x43   : > { %2549 = vmatprep.subr.msk.mxu1 %vm744_vm0, %v2147_v4  ;;  %2393 = vmatprep.subr.msk.mxu0 %vm744_vm0, %v2147_v4  ;;  %v611_v6 = vld [vmem:[%s3305_s2 + $0x8] sm:$0xf]  ;;  %v612_v8 = vld [vmem:[%s2855_s9] sm:$0xff]  ;;  %v614_v12 = vld [vmem:[%s2855_s9 + $0x10] sm:$0xff]  ;;  %s2290_s26 = sshll.u32 (%p2668_p5), %s2136_s21, 4 }
  0x44   : > { %2551 = vmatpush3.msk.msra.mxu1 %vm744_vm0, %v2147_v4  ;;  %2394 = vmatpush3.msk.msra.mxu0 %vm744_vm0, %v2147_v4  ;;  %v2247_v7 = vld [vmem:[%s3305_s2 + $0x28] sm:$0xf]  ;;  %v628_v9 = vld [vmem:[%s2855_s9 + $0x80] sm:$0xff]  ;;  %v630_v13 = vld [vmem:[%s2855_s9 + $0x90] sm:$0xff]  ;;  %s3230_s27 = scalar_lea.vmem (%p2668_p5), %s3308_s5, %s2290_s26 }
  0x45   : > { %2550 = vmatprep.subr.mxu1 %v2146_v5  ;;  %2395 = vmatprep.subr.mxu0 %v2146_v5  ;;  %v613_v10 = vld [vmem:[%s2855_s9 + $0x8] sm:$0xff]  ;;  %v615_v14 = vld [vmem:[%s2855_s9 + $0x18] sm:$0xff]  ;;  %v616_v17 = vld [vmem:[%s2855_s9 + $0x20] sm:$0xff] }
  0x46   : > { %2552 = vmatpush3.msra.mxu1 %v2146_v5  ;;  %2396 = vmatpush3.msra.mxu0 %v2146_v5  ;;  %v629_v11 = vld [vmem:[%s2855_s9 + $0x88] sm:$0xff]  ;;  %v631_v16 = vld [vmem:[%s2855_s9 + $0x98] sm:$0xff]  ;;  %v632_v18 = vld [vmem:[%s2855_s9 + $0xa0] sm:$0xff] }
  0x47   : > { %2397 = vmatprep.mubr.msk.f32.mxu0 %vm647_vm1, %v612_v8  ;;  %2421 = vmatprep.mubr.msk.f32.mxu1 %vm647_vm1, %v628_v9  ;;  %v2246_v19 = vld [vmem:[%s3305_s2 + $0x20] sm:$0xff]  ;;  %v617_v20 = vld [vmem:[%s2855_s9 + $0x28] sm:$0xff]  ;;  %v619_v24 = vld [vmem:[%s2855_s9 + $0x38] sm:$0xff] }
  0x48   : > { %2445 = vmatprep.subr.msk.mxu1 %vm744_vm0, %v611_v6  ;;  %2398 = vmatmul.mubr.msk.f32.vlgmr.msra.gmra.mxu0 %vm647_vm1, %v613_v10  ;;  %v633_v21 = vld [vmem:[%s2855_s9 + $0xa8] sm:$0xff]  ;;  %v618_v22 = vld [vmem:[%s2855_s9 + $0x30] sm:$0xff]  ;;  %v635_v25 = vld [vmem:[%s2855_s9 + $0xb8] sm:$0xff] }
  0x49   : > { %2422 = vmatmul.mubr.msk.f32.vlgmr.msra.gmra.mxu1 %vm647_vm1, %v629_v11  ;;  %2497 = vmatprep.subr.msk.mxu0 %vm744_vm0, %v2247_v7  ;;  %v634_v23 = vld [vmem:[%s2855_s9 + $0xb0] sm:$0xff]  ;;  %v620_v26 = vld [vmem:[%s2855_s9 + $0x40] sm:$0xff]  ;;  %v621_v28 = vld [vmem:[%s2855_s9 + $0x48] sm:$0xff] }
  0x4a   : > { %2446 = vmatpush3.msk.msra.mxu1 %vm744_vm0, %v611_v6  ;;  %2498 = vmatpush3.msk.msra.mxu0 %vm744_vm0, %v2247_v7  ;;  %v636_v27 = vld [vmem:[%s2855_s9 + $0xc0] sm:$0xff]  ;;  %v637_v29 = vld [vmem:[%s2855_s9 + $0xc8] sm:$0xff]  ;;  %v622_v30 = vld [vmem:[%s2855_s9 + $0x50] sm:$0xff] }
  0x4b   : > { %2400 = vmatprep.mubr.msk.f32.mxu0 %vm647_vm1, %v614_v12  ;;  %2424 = vmatprep.mubr.msk.f32.mxu1 %vm647_vm1, %v630_v13  ;;  %v638_v31 = vld [vmem:[%s2855_s9 + $0xd0] sm:$0xff]  ;;  %v623_v32 = vld [vmem:[%s2855_s9 + $0x58] sm:$0xff]  ;;  %v624_v34 = vld [vmem:[%s2855_s9 + $0x60] sm:$0xff] }
  0x4c   : > { %2401 = vmatmul.mubr.msk.f32.gmra.mxu0 %vm647_vm1, %v615_v14  ;;  %2447 = vmatprep.subr.mxu1 %v610_v15  ;;  %v639_v33 = vld [vmem:[%s2855_s9 + $0xd8] sm:$0xff]  ;;  %v640_v35 = vld [vmem:[%s2855_s9 + $0xe0] sm:$0xff]  ;;  %v625_v36 = vld [vmem:[%s2855_s9 + $0x68] sm:$0xff] }
  0x4d   : > { %2425 = vmatmul.mubr.msk.f32.gmra.mxu1 %vm647_vm1, %v631_v16  ;;  %2403 = vmatprep.mubr.msk.f32.mxu0 %vm647_vm1, %v616_v17  ;;  %v641_v37 = vld [vmem:[%s2855_s9 + $0xe8] sm:$0xff]  ;;  %v626_v38 = vld [vmem:[%s2855_s9 + $0x70] sm:$0xff]  ;;  %v627_v40 = vld [vmem:[%s2855_s9 + $0x78] sm:$0xff] }
  0x4e   : > { %2427 = vmatprep.mubr.msk.f32.mxu1 %vm647_vm1, %v632_v18  ;;  %2448 = vmatpush3.msra.mxu1 %v610_v15  ;;  %v642_v39 = vld [vmem:[%s2855_s9 + $0xf0] sm:$0xff]  ;;  %v643_v41 = vld [vmem:[%s2855_s9 + $0xf8] sm:$0xff]  ;;  %v578_v43 = vld [vmem:[%s2930_s14] sm:$0xff] }
  0x4f   : > { %2499 = vmatprep.subr.mxu0 %v2246_v19  ;;  %v2214_v42 = vld [vmem:[%s2930_s14 + $0x10] sm:$0xff]  ;;  %v2215_v44 = vld [vmem:[%s2930_s14 + $0x18] sm:$0xff]  ;;  %v579_v45 = vld [vmem:[%s2930_s14 + $0x8] sm:$0xff] }
  0x50   : > { %2404 = vmatmul.mubr.msk.f32.gmra.mxu0 %vm647_vm1, %v617_v20  ;;  %v2216_v46 = vld [vmem:[%s2930_s14 + $0x20] sm:$0xff]  ;;  %v2217_v47 = vld [vmem:[%s2930_s14 + $0x28] sm:$0xff]  ;;  %v2218_v48 = vld [vmem:[%s2930_s14 + $0x30] sm:$0xff] }
  0x51   : > { %2428 = vmatmul.mubr.msk.f32.gmra.mxu1 %vm647_vm1, %v633_v21  ;;  %2406 = vmatprep.mubr.msk.f32.mxu0 %vm647_vm1, %v618_v22  ;;  %v2219_v49 = vld [vmem:[%s2930_s14 + $0x38] sm:$0xff]  ;;  %v2220_v50 = vld [vmem:[%s2930_s14 + $0x40] sm:$0xff]  ;;  %v2221_v51 = vld [vmem:[%s2930_s14 + $0x48] sm:$0xff] }
  0x52   : > { %2430 = vmatprep.mubr.msk.f32.mxu1 %vm647_vm1, %v634_v23  ;;  %2500 = vmatpush3.msra.mxu0 %v2246_v19  ;;  %v2222_v52 = vld [vmem:[%s2930_s14 + $0x50] sm:$0xff]  ;;  %v2223_v53 = vld [vmem:[%s2930_s14 + $0x58] sm:$0xff]  ;;  %v2224_v54 = vld [vmem:[%s2930_s14 + $0x60] sm:$0xff] }
  0x53   : > { %v2225_v55 = vld [vmem:[%s2930_s14 + $0x68] sm:$0xff]  ;;  %v2226_v56 = vld [vmem:[%s2930_s14 + $0x70] sm:$0xff]  ;;  %v2227_v57 = vld [vmem:[%s2930_s14 + $0x78] sm:$0xff] }
  0x54   : > { %2407 = vmatmul.mubr.msk.f32.gmra.mxu0 %vm647_vm1, %v619_v24  ;;  %v2228_v58 = vld [vmem:[%s2930_s14 + $0x80] sm:$0xff]  ;;  %v2229_v59 = vld [vmem:[%s2930_s14 + $0x88] sm:$0xff]  ;;  %v2230_v60 = vld [vmem:[%s2930_s14 + $0x90] sm:$0xff] }
  0x55   : > { %2431 = vmatmul.mubr.msk.f32.gmra.mxu1 %vm647_vm1, %v635_v25  ;;  %2409 = vmatprep.mubr.msk.f32.mxu0 %vm647_vm1, %v620_v26  ;;  %v2231_v61 = vld [vmem:[%s2930_s14 + $0x98] sm:$0xff]  ;;  %v2232_v62 = vld [vmem:[%s2930_s14 + $0xa0] sm:$0xff]  ;;  %v2233_v63 = vld [vmem:[%s2930_s14 + $0xa8] sm:$0xff] }
  0x56   : > { %2433 = vmatprep.mubr.msk.f32.mxu1 %vm647_vm1, %v636_v27  ;;  %v2234_v0 = vld [vmem:[%s2930_s14 + $0xb0] sm:$0xff]  ;;  %v2235_v1 = vld [vmem:[%s2930_s14 + $0xb8] sm:$0xff]  ;;  %v2236_v2 = vld [vmem:[%s2930_s14 + $0xc0] sm:$0xff] }
  0x57   : > { %v2237_v3 = vld [vmem:[%s2930_s14 + $0xc8] sm:$0xff]  ;;  %v2238_v4 = vld [vmem:[%s2930_s14 + $0xd0] sm:$0xff]  ;;  %v2239_v5 = vld [vmem:[%s2930_s14 + $0xd8] sm:$0xff] }
  0x58   : > { %2410 = vmatmul.mubr.msk.f32.gmra.mxu0 %vm647_vm1, %v621_v28  ;;  %v2240_v6 = vld [vmem:[%s2930_s14 + $0xe0] sm:$0xff]  ;;  %v2241_v7 = vld [vmem:[%s2930_s14 + $0xe8] sm:$0xff]  ;;  %v2242_v8 = vld [vmem:[%s2930_s14 + $0xf0] sm:$0xff] }
  0x59   : > { %2434 = vmatmul.mubr.msk.f32.gmra.mxu1 %vm647_vm1, %v637_v29  ;;  %2412 = vmatprep.mubr.msk.f32.mxu0 %vm647_vm1, %v622_v30  ;;  %v2243_v9 = vld [vmem:[%s2930_s14 + $0xf8] sm:$0xff]  ;;  %v2244_v10 = vld [vmem:[%s2930_s14 + $0x100] sm:$0xff]  ;;  %v2245_v11 = vld [vmem:[%s2930_s14 + $0x108] sm:$0xff] }
  0x5a   : > { %2436 = vmatprep.mubr.msk.f32.mxu1 %vm647_vm1, %v638_v31 }
  0x5c   : > { %2413 = vmatmul.mubr.msk.f32.gmra.mxu0 %vm647_vm1, %v623_v32 }
  0x5d   : > { %2437 = vmatmul.mubr.msk.f32.gmra.mxu1 %vm647_vm1, %v639_v33  ;;  %2415 = vmatprep.mubr.msk.f32.mxu0 %vm647_vm1, %v624_v34 }
  0x5e   : > { %2439 = vmatprep.mubr.msk.f32.mxu1 %vm647_vm1, %v640_v35 }
  0x60   : > { %2416 = vmatmul.mubr.msk.f32.gmra.mxu0 %vm647_vm1, %v625_v36 }
  0x61   : > { %2440 = vmatmul.mubr.msk.f32.gmra.mxu1 %vm647_vm1, %v641_v37  ;;  %2418 = vmatprep.mubr.msk.f32.mxu0 %vm647_vm1, %v626_v38 }
  0x62   : > { %2442 = vmatprep.mubr.msk.f32.mxu1 %vm647_vm1, %v642_v39 }
  0x64   : > { %2419 = vmatmul.mubr.msk.f32.gmra.mxu0 %vm647_vm1, %v627_v40 }
  0x65   : > { %2443 = vmatmul.mubr.msk.f32.gmra.mxu1 %vm647_vm1, %v643_v41  ;;  %2501 = vmatprep.mubr.msk.f32.mxu0 %vm647_vm1, %v2214_v42 }
  0x66   : > { %2449 = vmatprep.mubr.msk.f32.mxu1 %vm647_vm1, %v578_v43 }
  0x68   : > { %2502 = vmatmul.mubr.msk.f32.vlgmr.msra.gmra.mxu0 %vm647_vm1, %v2215_v44 }
  0x69   : > { %2450 = vmatmul.mubr.msk.f32.vlgmr.msra.gmra.mxu1 %vm647_vm1, %v579_v45  ;;  %2504 = vmatprep.mubr.msk.f32.mxu0 %vm647_vm1, %v2216_v46 }
  0x6a   : > { %2452 = vmatprep.mubr.msk.f32.mxu1 %vm647_vm1, %v2214_v42 }
  0x6c   : > { %2505 = vmatmul.mubr.msk.f32.gmra.mxu0 %vm647_vm1, %v2217_v47 }
  0x6d   : > { %2453 = vmatmul.mubr.msk.f32.gmra.mxu1 %vm647_vm1, %v2215_v44  ;;  %2507 = vmatprep.mubr.msk.f32.mxu0 %vm647_vm1, %v2218_v48 }
  0x6e   : > { %2455 = vmatprep.mubr.msk.f32.mxu1 %vm647_vm1, %v2216_v46 }
  0x70   : > { %2508 = vmatmul.mubr.msk.f32.gmra.mxu0 %vm647_vm1, %v2219_v49 }
  0x71   : > { %2456 = vmatmul.mubr.msk.f32.gmra.mxu1 %vm647_vm1, %v2217_v47  ;;  %2510 = vmatprep.mubr.msk.f32.mxu0 %vm647_vm1, %v2220_v50 }
  0x72   : > { %2458 = vmatprep.mubr.msk.f32.mxu1 %vm647_vm1, %v2218_v48  ;;  %v3087_v48 = vld [vmem:[%s3306_s3] ss:$0 sm:$0xff] }
  0x74   : > { %2511 = vmatmul.mubr.msk.f32.gmra.mxu0 %vm647_vm1, %v2221_v51 }
  0x75   : > { %2459 = vmatmul.mubr.msk.f32.gmra.mxu1 %vm647_vm1, %v2219_v49  ;;  %2513 = vmatprep.mubr.msk.f32.mxu0 %vm647_vm1, %v2222_v52 }
  0x76   : > { %2461 = vmatprep.mubr.msk.f32.mxu1 %vm647_vm1, %v2220_v50 }
  0x78   : > { %2514 = vmatmul.mubr.msk.f32.gmra.mxu0 %vm647_vm1, %v2223_v53 }
  0x79   : > { %2462 = vmatmul.mubr.msk.f32.gmra.mxu1 %vm647_vm1, %v2221_v51  ;;  %2516 = vmatprep.mubr.msk.f32.mxu0 %vm647_vm1, %v2224_v54 }
  0x7a   : > { %2464 = vmatprep.mubr.msk.f32.mxu1 %vm647_vm1, %v2222_v52 }
  0x7c   : > { %2517 = vmatmul.mubr.msk.f32.gmra.mxu0 %vm647_vm1, %v2225_v55 }
  0x7d   : > { %2465 = vmatmul.mubr.msk.f32.gmra.mxu1 %vm647_vm1, %v2223_v53  ;;  %2519 = vmatprep.mubr.msk.f32.mxu0 %vm647_vm1, %v2226_v56  ;;  %v3092_v53 = vld [vmem:[%s3307_s4] ss:$0 sm:$0xff] }
  0x7e   : > { %2467 = vmatprep.mubr.msk.f32.mxu1 %vm647_vm1, %v2224_v54 }
  0x80   : > { %2520 = vmatmul.mubr.msk.f32.gmra.mxu0 %vm647_vm1, %v2227_v57 }
  0x81   : > { %2468 = vmatmul.mubr.msk.f32.gmra.mxu1 %vm647_vm1, %v2225_v55  ;;  %2522 = vmatprep.mubr.msk.f32.mxu0 %vm647_vm1, %v2228_v58 }
  0x82   : > { %2470 = vmatprep.mubr.msk.f32.mxu1 %vm647_vm1, %v2226_v56 }
  0x84   : > { %2523 = vmatmul.mubr.msk.f32.gmra.mxu0 %vm647_vm1, %v2229_v59 }
  0x85   : > { %2471 = vmatmul.mubr.msk.f32.gmra.mxu1 %vm647_vm1, %v2227_v57  ;;  %2525 = vmatprep.mubr.msk.f32.mxu0 %vm647_vm1, %v2230_v60 }
  0x86   : > { %2473 = vmatprep.mubr.msk.f32.mxu1 %vm647_vm1, %v2228_v58 }
  0x88   : > { %2526 = vmatmul.mubr.msk.f32.gmra.mxu0 %vm647_vm1, %v2231_v61 }
  0x89   : > { %2474 = vmatmul.mubr.msk.f32.gmra.mxu1 %vm647_vm1, %v2229_v59  ;;  %2528 = vmatprep.mubr.msk.f32.mxu0 %vm647_vm1, %v2232_v62 }
  0x8a   : > { %2476 = vmatprep.mubr.msk.f32.mxu1 %vm647_vm1, %v2230_v60 }
  0x8c   : > { %2529 = vmatmul.mubr.msk.f32.gmra.mxu0 %vm647_vm1, %v2233_v63 }
  0x8d   : > { %2477 = vmatmul.mubr.msk.f32.gmra.mxu1 %vm647_vm1, %v2231_v61  ;;  %2531 = vmatprep.mubr.msk.f32.mxu0 %vm647_vm1, %v2234_v0 }
  0x8e   : > { %2479 = vmatprep.mubr.msk.f32.mxu1 %vm647_vm1, %v2232_v62 }
  0x90   : > { %2532 = vmatmul.mubr.msk.f32.gmra.mxu0 %vm647_vm1, %v2235_v1 }
  0x91   : > { %2480 = vmatmul.mubr.msk.f32.gmra.mxu1 %vm647_vm1, %v2233_v63  ;;  %2534 = vmatprep.mubr.msk.f32.mxu0 %vm647_vm1, %v2236_v2 }
  0x92   : > { %2482 = vmatprep.mubr.msk.f32.mxu1 %vm647_vm1, %v2234_v0 }
  0x94   : > { %2535 = vmatmul.mubr.msk.f32.gmra.mxu0 %vm647_vm1, %v2237_v3 }
  0x95   : > { %2483 = vmatmul.mubr.msk.f32.gmra.mxu1 %vm647_vm1, %v2235_v1  ;;  %2537 = vmatprep.mubr.msk.f32.mxu0 %vm647_vm1, %v2238_v4 }
  0x96   : > { %2485 = vmatprep.mubr.msk.f32.mxu1 %vm647_vm1, %v2236_v2 }
  0x98   : > { %2538 = vmatmul.mubr.msk.f32.gmra.mxu0 %vm647_vm1, %v2239_v5 }
  0x99   : > { %2486 = vmatmul.mubr.msk.f32.gmra.mxu1 %vm647_vm1, %v2237_v3  ;;  %2540 = vmatprep.mubr.msk.f32.mxu0 %vm647_vm1, %v2240_v6 }
  0x9a   : > { %2488 = vmatprep.mubr.msk.f32.mxu1 %vm647_vm1, %v2238_v4 }
  0x9c   : > { %2541 = vmatmul.mubr.msk.f32.gmra.mxu0 %vm647_vm1, %v2241_v7 }
  0x9d   : > { %2489 = vmatmul.mubr.msk.f32.gmra.mxu1 %vm647_vm1, %v2239_v5  ;;  %2543 = vmatprep.mubr.msk.f32.mxu0 %vm647_vm1, %v2242_v8 }
  0x9e   : > { %2491 = vmatprep.mubr.msk.f32.mxu1 %vm647_vm1, %v2240_v6 }
  0xa0   : > { %2544 = vmatmul.mubr.msk.f32.gmra.mxu0 %vm647_vm1, %v2243_v9 }
  0xa1   : > { %2492 = vmatmul.mubr.msk.f32.gmra.mxu1 %vm647_vm1, %v2241_v7  ;;  %2546 = vmatprep.mubr.msk.f32.mxu0 %vm647_vm1, %v2244_v10 }
  0xa2   : > { %2494 = vmatprep.mubr.msk.f32.mxu1 %vm647_vm1, %v2242_v8 }
  0xa4   : > { %2547 = vmatmul.mubr.msk.f32.gmra.mxu0 %vm647_vm1, %v2245_v11 }
  0xa5   : > { %2495 = vmatmul.mubr.msk.f32.gmra.mxu1 %vm647_vm1, %v2243_v9 }
 0x108   : > { %v2399_v12 = vpop.f32.mrf.mxu0 }
 0x109   : > { %v3032_v13 = vpop.f32.mrf.mxu1 }
 0x10a   : > { %v814_v14 = vpop.f32.mrf.mxu0 }
 0x10b   : > { %v3034_v15 = vpop.f32.mrf.mxu1 }
 0x10c   : > { %v2402_v16 = vpop.f32.mrf.mxu0 }
 0x10d   : > { %v3036_v17 = vpop.f32.mrf.mxu1 }
 0x10e   : > { %v824_v18 = vpop.f32.mrf.mxu0 }
 0x10f   : > { %v3038_v19 = vpop.f32.mrf.mxu1 }
 0x110   : > { %v2405_v20 = vpop.f32.mrf.mxu0 }
 0x111   : > { %v3040_v21 = vpop.f32.mrf.mxu1 }
 0x112   : > { %v834_v22 = vpop.f32.mrf.mxu0 }
 0x113   : > { %v3042_v23 = vpop.f32.mrf.mxu1 }
 0x114   : > { %v3044_v24 = vpop.f32.mrf.mxu0 }
 0x115   : > { %v3046_v25 = vpop.f32.mrf.mxu1 }
 0x116   : > { %v3048_v26 = vpop.f32.mrf.mxu0 }
 0x117   : > { %v3050_v27 = vpop.f32.mrf.mxu1 }
 0x118   : > { %v3052_v28 = vpop.f32.mrf.mxu0 }
 0x119   : > { %v3054_v29 = vpop.f32.mrf.mxu1 }
 0x11a   : > { %v3056_v30 = vpop.f32.mrf.mxu0 }
 0x11b   : > { %v3058_v31 = vpop.f32.mrf.mxu1 }
 0x11c   : > { %v3060_v32 = vpop.f32.mrf.mxu0 }
 0x11d   : > { %v3062_v33 = vpop.f32.mrf.mxu1 }
 0x11e   : > { %v3064_v34 = vpop.f32.mrf.mxu0 }
 0x11f   : > { %v3066_v35 = vpop.f32.mrf.mxu1 }
 0x120   : > { %v3068_v36 = vpop.f32.mrf.mxu0 }
 0x121   : > { %v3070_v37 = vpop.f32.mrf.mxu1 }
 0x122   : > { %v3072_v38 = vpop.f32.mrf.mxu0 }
 0x123   : > { %v3074_v39 = vpop.f32.mrf.mxu1 }
 0x124   : > { %v3076_v40 = vpop.f32.mrf.mxu0 }
 0x125   : > { %v3078_v41 = vpop.f32.mrf.mxu1 }
 0x126   : > { %v3080_v42 = vpop.f32.mrf.mxu0 }
 0x127   : > { %v3082_v43 = vpop.f32.mrf.mxu1 }
 0x128   : > { %v2503_v44 = vpop.f32.mrf.mxu0 }
 0x129   : > { %v2451_v45 = vpop.f32.mrf.mxu1 }
 0x12a   : > { %v1144_v46 = vadd.f32 %v2451_v45, %v2399_v12  ;;  %v1498_v47 = vpop.f32.mrf.mxu0 }
 0x12b   : > { %v1138_v49 = vpop.f32.mrf.mxu1 }
 0x12c   : > { %v1658_v50 = vadd.f32 %v2503_v44, %v1144_v46  ;;  %v1139_v51 = vadd.f32 %v1138_v49, %v814_v14  ;;  %v2506_v52 = vpop.f32.mrf.mxu0 }
 0x12d   : > { %v2454_v54 = vpop.f32.mrf.mxu1 }
 0x12e   : > { %v1697_v55 = vmul.f32 %v3087_v48, %v1658_v50  ;;  %v1657_v56 = vadd.f32 %v1498_v47, %v1139_v51  ;;  %v1154_v57 = vadd.f32 %v2454_v54, %v2402_v16  ;;  %v1508_v58 = vpop.f32.mrf.mxu0 }
 0x12f   : > { %v1148_v59 = vpop.f32.mrf.mxu1 }
 0x130   : > { %v1736_v60 = vadd.f32 %v3092_v53, %v1697_v55  ;;  %v1696_v61 = vmul.f32 %v3087_v48, %v1657_v56  ;;  %v1660_v62 = vadd.f32 %v2506_v52, %v1154_v57  ;;  %v1149_v63 = vadd.f32 %v1148_v59, %v824_v18  ;;  %v2509_v0 = vpop.f32.mrf.mxu0 }
 0x131   : > { %v2457_v1 = vpop.f32.mrf.mxu1 }
 0x132   : > { %vm1768_vm2 = vcmp.ge.f32.partialorder %v1736_v60, 0.0  ;;  %v1800_v2 = vmul.f32 0.01, %v1736_v60  ;;  %v1735_v3 = vadd.f32 %v3092_v53, %v1696_v61  ;;  %v1699_v4 = vmul.f32 %v3087_v48, %v1660_v62  ;;  %v1518_v5 = vpop.f32.mrf.mxu0 }
 0x133   : > { %v1659_v6 = vadd.f32 %v1508_v58, %v1149_v63  ;;  %v1164_v7 = vadd.f32 %v2457_v1, %v2405_v20  ;;  %v1158_v8 = vpop.f32.mrf.mxu1 }
 0x134   : > { %v1832_v9 = vsel %vm1768_vm2, %v1736_v60, %v1800_v2  ;;  %vm1767_vm3 = vcmp.ge.f32.partialorder %v1735_v3, 0.0  ;;  %v1799_v10 = vmul.f32 0.01, %v1735_v3  ;;  %v1738_v11 = vadd.f32 %v3092_v53, %v1699_v4  ;;  %v2512_v12 = vpop.f32.mrf.mxu0 }
 0x135   : > { %1864 = vst [vmem:[%s3102_s18 + $0x8] sm:$0xff] %v1832_v9  ;;  %v1698_v14 = vmul.f32 %v3087_v48, %v1659_v6  ;;  %v1662_v16 = vadd.f32 %v2509_v0, %v1164_v7  ;;  %v1159_v18 = vadd.f32 %v1158_v8, %v834_v22  ;;  %v2460_v44 = vpop.f32.mrf.mxu1 }
 0x136   : > { %v1831_v45 = vsel %vm1767_vm3, %v1735_v3, %v1799_v10  ;;  %vm1770_vm4 = vcmp.ge.f32.partialorder %v1738_v11, 0.0  ;;  %v1802_v20 = vmul.f32 0.01, %v1738_v11  ;;  %v1174_v46 = vadd.f32 %v2460_v44, %v3044_v24  ;;  %v1528_v47 = vpop.f32.mrf.mxu0 }
 0x137   : > { %1863 = vst [vmem:[%s3102_s18] sm:$0xff] %v1831_v45  ;;  %v1737_v49 = vadd.f32 %v3092_v53, %v1698_v14  ;;  %v1701_v50 = vmul.f32 %v3087_v48, %v1662_v16  ;;  %v1661_v51 = vadd.f32 %v1518_v5, %v1159_v18  ;;  %v1168_v52 = vpop.f32.mrf.mxu1 }
 0x138   : > { %v1834_v54 = vsel %vm1770_vm4, %v1738_v11, %v1802_v20  ;;  %v1664_v55 = vadd.f32 %v2512_v12, %v1174_v46  ;;  %v1169_v56 = vadd.f32 %v1168_v52, %v3048_v26  ;;  %v2515_v22 = vpop.f32.mrf.mxu0 }
 0x139   : > { %1866 = vst [vmem:[%s3102_s18 + $0x18] sm:$0xff] %v1834_v54  ;;  %vm1769_vm5 = vcmp.ge.f32.partialorder %v1737_v49, 0.0  ;;  %v1801_v57 = vmul.f32 0.01, %v1737_v49  ;;  %v1740_v58 = vadd.f32 %v3092_v53, %v1701_v50  ;;  %v1700_v24 = vmul.f32 %v3087_v48, %v1661_v51  ;;  %v2463_v59 = vpop.f32.mrf.mxu1 }
 0x13a   : > { %v1703_v60 = vmul.f32 %v3087_v48, %v1664_v55  ;;  %v1663_v61 = vadd.f32 %v1528_v47, %v1169_v56  ;;  %v1184_v62 = vadd.f32 %v2463_v59, %v3052_v28  ;;  %v1538_v63 = vpop.f32.mrf.mxu0 }
 0x13b   : > { %v1833_v0 = vsel %vm1769_vm5, %v1737_v49, %v1801_v57  ;;  %vm1772_vm6 = vcmp.ge.f32.partialorder %v1740_v58, 0.0  ;;  %v1804_v26 = vmul.f32 0.01, %v1740_v58  ;;  %v1739_v1 = vadd.f32 %v3092_v53, %v1700_v24  ;;  %v1178_v2 = vpop.f32.mrf.mxu1 }
 0x13c   : > { %1865 = vst [vmem:[%s3102_s18 + $0x10] sm:$0xff] %v1833_v0  ;;  %v1742_v3 = vadd.f32 %v3092_v53, %v1703_v60  ;;  %v1702_v4 = vmul.f32 %v3087_v48, %v1663_v61  ;;  %v1666_v5 = vadd.f32 %v2515_v22, %v1184_v62  ;;  %v1179_v6 = vadd.f32 %v1178_v2, %v3056_v30  ;;  %v2518_v7 = vpop.f32.mrf.mxu0 }
 0x13d   : > { %v1836_v8 = vsel %vm1772_vm6, %v1740_v58, %v1804_v26  ;;  %vm1771_vm7 = vcmp.ge.f32.partialorder %v1739_v1, 0.0  ;;  %v1803_v28 = vmul.f32 0.01, %v1739_v1  ;;  %v2466_v9 = vpop.f32.mrf.mxu1 }
 0x13e   : > { %1868 = vst [vmem:[%s3102_s18 + $0x28] sm:$0xff] %v1836_v8  ;;  %vm1774_vm8 = vcmp.ge.f32.partialorder %v1742_v3, 0.0  ;;  %v1806_v10 = vmul.f32 0.01, %v1742_v3  ;;  %v1741_v11 = vadd.f32 %v3092_v53, %v1702_v4  ;;  %v1705_v12 = vmul.f32 %v3087_v48, %v1666_v5  ;;  %v1548_v14 = vpop.f32.mrf.mxu0 }
 0x13f   : > { %v1835_v16 = vsel %vm1771_vm7, %v1739_v1, %v1803_v28  ;;  %v1665_v18 = vadd.f32 %v1538_v63, %v1179_v6  ;;  %v1194_v44 = vadd.f32 %v2466_v9, %v3060_v32  ;;  %v1188_v30 = vpop.f32.mrf.mxu1 }
 0x140   : > { %1867 = vst [vmem:[%s3102_s18 + $0x20] sm:$0xff] %v1835_v16  ;;  %v1838_v45 = vsel %vm1774_vm8, %v1742_v3, %v1806_v10  ;;  %vm1773_vm9 = vcmp.ge.f32.partialorder %v1741_v11, 0.0  ;;  %v1805_v20 = vmul.f32 0.01, %v1741_v11  ;;  %v1744_v46 = vadd.f32 %v3092_v53, %v1705_v12  ;;  %v2521_v47 = vpop.f32.mrf.mxu0 }
 0x141   : > { %1870 = vst [vmem:[%s3102_s18 + $0x38] sm:$0xff] %v1838_v45  ;;  %v1704_v49 = vmul.f32 %v3087_v48, %v1665_v18  ;;  %v1668_v50 = vadd.f32 %v2518_v7, %v1194_v44  ;;  %v1189_v51 = vadd.f32 %v1188_v30, %v3064_v34  ;;  %v2469_v52 = vpop.f32.mrf.mxu1 }
 0x142   : > { %v1837_v54 = vsel %vm1773_vm9, %v1741_v11, %v1805_v20  ;;  %vm1776_vm10 = vcmp.ge.f32.partialorder %v1744_v46, 0.0  ;;  %v1808_v32 = vmul.f32 0.01, %v1744_v46  ;;  %v1204_v55 = vadd.f32 %v2469_v52, %v3068_v36  ;;  %v1558_v56 = vpop.f32.mrf.mxu0 }
 0x143   : > { %1869 = vst [vmem:[%s3102_s18 + $0x30] sm:$0xff] %v1837_v54  ;;  %v1743_v22 = vadd.f32 %v3092_v53, %v1704_v49  ;;  %v1707_v57 = vmul.f32 %v3087_v48, %v1668_v50  ;;  %v1667_v58 = vadd.f32 %v1548_v14, %v1189_v51  ;;  %v1198_v24 = vpop.f32.mrf.mxu1 }
 0x144   : > { %v1840_v59 = vsel %vm1776_vm10, %v1744_v46, %v1808_v32  ;;  %v1670_v60 = vadd.f32 %v2521_v47, %v1204_v55  ;;  %v1199_v61 = vadd.f32 %v1198_v24, %v3072_v38  ;;  %v2524_v34 = vpop.f32.mrf.mxu0 }
 0x145   : > { %1872 = vst [vmem:[%s3102_s18 + $0x48] sm:$0xff] %v1840_v59  ;;  %vm1775_vm11 = vcmp.ge.f32.partialorder %v1743_v22, 0.0  ;;  %v1807_v62 = vmul.f32 0.01, %v1743_v22  ;;  %v1746_v63 = vadd.f32 %v3092_v53, %v1707_v57  ;;  %v1706_v36 = vmul.f32 %v3087_v48, %v1667_v58  ;;  %v2472_v0 = vpop.f32.mrf.mxu1 }
 0x146   : > { %v1709_v26 = vmul.f32 %v3087_v48, %v1670_v60  ;;  %v1669_v1 = vadd.f32 %v1558_v56, %v1199_v61  ;;  %v1214_v2 = vadd.f32 %v2472_v0, %v3076_v40  ;;  %v1568_v3 = vpop.f32.mrf.mxu0 }
 0x147   : > { %v1839_v4 = vsel %vm1775_vm11, %v1743_v22, %v1807_v62  ;;  %vm1778_vm12 = vcmp.ge.f32.partialorder %v1746_v63, 0.0  ;;  %v1810_v38 = vmul.f32 0.01, %v1746_v63  ;;  %v1745_v5 = vadd.f32 %v3092_v53, %v1706_v36  ;;  %v1208_v6 = vpop.f32.mrf.mxu1 }
 0x148   : > { %1871 = vst [vmem:[%s3102_s18 + $0x40] sm:$0xff] %v1839_v4  ;;  %v1748_v7 = vadd.f32 %v3092_v53, %v1709_v26  ;;  %v1708_v8 = vmul.f32 %v3087_v48, %v1669_v1  ;;  %v1672_v28 = vadd.f32 %v2524_v34, %v1214_v2  ;;  %v1209_v9 = vadd.f32 %v1208_v6, %v3080_v42  ;;  %v2527_v10 = vpop.f32.mrf.mxu0 }
 0x149   : > { %v1842_v11 = vsel %vm1778_vm12, %v1746_v63, %v1810_v38  ;;  %vm1777_vm13 = vcmp.ge.f32.partialorder %v1745_v5, 0.0  ;;  %v1809_v40 = vmul.f32 0.01, %v1745_v5  ;;  %v2475_v12 = vpop.f32.mrf.mxu1 }
 0x14a   : > { %1874 = vst [vmem:[%s3102_s18 + $0x58] sm:$0xff] %v1842_v11  ;;  %vm1780_vm14 = vcmp.ge.f32.partialorder %v1748_v7, 0.0  ;;  %v1812_v14 = vmul.f32 0.01, %v1748_v7  ;;  %v1747_v16 = vadd.f32 %v3092_v53, %v1708_v8  ;;  %v1711_v18 = vmul.f32 %v3087_v48, %v1672_v28  ;;  %v1578_v44 = vpop.f32.mrf.mxu0 }
 0x14b   : > { %v1841_v30 = vsel %vm1777_vm13, %v1745_v5, %v1809_v40  ;;  %v1671_v45 = vadd.f32 %v1568_v3, %v1209_v9  ;;  %v1224_v20 = vadd.f32 %v2475_v12, %v3032_v13  ;;  %v1218_v42 = vpop.f32.mrf.mxu1 }
 0x14c   : > { %1873 = vst [vmem:[%s3102_s18 + $0x50] sm:$0xff] %v1841_v30  ;;  %v1844_v46 = vsel %vm1780_vm14, %v1748_v7, %v1812_v14  ;;  %vm1779_vm15 = vcmp.ge.f32.partialorder %v1747_v16, 0.0  ;;  %v1811_v47 = vmul.f32 0.01, %v1747_v16  ;;  %v1750_v49 = vadd.f32 %v3092_v53, %v1711_v18  ;;  %v2530_v50 = vpop.f32.mrf.mxu0 }
 0x14d   : > { %1876 = vst [vmem:[%s3102_s18 + $0x68] sm:$0xff] %v1844_v46  ;;  %v1710_v51 = vmul.f32 %v3087_v48, %v1671_v45  ;;  %v1674_v52 = vadd.f32 %v2527_v10, %v1224_v20  ;;  %v1219_v54 = vadd.f32 %v1218_v42, %v3034_v15  ;;  %v2478_v32 = vpop.f32.mrf.mxu1 }
 0x14e   : > { %v1843_v55 = vsel %vm1779_vm15, %v1747_v16, %v1811_v47  ;;  %vm1782_vm0 = vcmp.ge.f32.partialorder %v1750_v49, 0.0  ;;  %v1814_v13 = vmul.f32 0.01, %v1750_v49  ;;  %v1234_v56 = vadd.f32 %v2478_v32, %v3036_v17  ;;  %v1588_v22 = vpop.f32.mrf.mxu0 }
 0x14f   : > { %1875 = vst [vmem:[%s3102_s18 + $0x60] sm:$0xff] %v1843_v55  ;;  %v1749_v57 = vadd.f32 %v3092_v53, %v1710_v51  ;;  %v1713_v58 = vmul.f32 %v3087_v48, %v1674_v52  ;;  %v1673_v24 = vadd.f32 %v1578_v44, %v1219_v54  ;;  %v1228_v59 = vpop.f32.mrf.mxu1 }
 0x150   : > { %v1846_v60 = vsel %vm1782_vm0, %v1750_v49, %v1814_v13  ;;  %v1676_v61 = vadd.f32 %v2530_v50, %v1234_v56  ;;  %v1229_v34 = vadd.f32 %v1228_v59, %v3038_v19  ;;  %v2533_v15 = vpop.f32.mrf.mxu0 }
 0x151   : > { %1878 = vst [vmem:[%s3102_s18 + $0x78] sm:$0xff] %v1846_v60  ;;  %vm1781_vm1 = vcmp.ge.f32.partialorder %v1749_v57, 0.0  ;;  %v1813_v62 = vmul.f32 0.01, %v1749_v57  ;;  %v1752_v63 = vadd.f32 %v3092_v53, %v1713_v58  ;;  %v1712_v17 = vmul.f32 %v3087_v48, %v1673_v24  ;;  %v2481_v36 = vpop.f32.mrf.mxu1 }
 0x152   : > { %v1715_v0 = vmul.f32 %v3087_v48, %v1676_v61  ;;  %v1675_v26 = vadd.f32 %v1588_v22, %v1229_v34  ;;  %v1244_v1 = vadd.f32 %v2481_v36, %v3040_v21  ;;  %v1598_v2 = vpop.f32.mrf.mxu0 }
 0x153   : > { %v1845_v3 = vsel %vm1781_vm1, %v1749_v57, %v1813_v62  ;;  %vm1784_vm2 = vcmp.ge.f32.partialorder %v1752_v63, 0.0  ;;  %v1816_v19 = vmul.f32 0.01, %v1752_v63  ;;  %v1751_v4 = vadd.f32 %v3092_v53, %v1712_v17  ;;  %v1238_v38 = vpop.f32.mrf.mxu1 }
 0x154   : > { %1877 = vst [vmem:[%s3102_s18 + $0x70] sm:$0xff] %v1845_v3  ;;  %v1754_v5 = vadd.f32 %v3092_v53, %v1715_v0  ;;  %v1714_v6 = vmul.f32 %v3087_v48, %v1675_v26  ;;  %v1678_v7 = vadd.f32 %v2533_v15, %v1244_v1  ;;  %v1239_v8 = vadd.f32 %v1238_v38, %v3042_v23  ;;  %v2536_v28 = vpop.f32.mrf.mxu0 }
 0x155   : > { %v1848_v9 = vsel %vm1784_vm2, %v1752_v63, %v1816_v19  ;;  %vm1783_vm3 = vcmp.ge.f32.partialorder %v1751_v4, 0.0  ;;  %v1815_v21 = vmul.f32 0.01, %v1751_v4  ;;  %v2484_v10 = vpop.f32.mrf.mxu1 }
 0x156   : > { %1880 = vst [vmem:[%s3102_s18 + $0x88] sm:$0xff] %v1848_v9  ;;  %vm1786_vm4 = vcmp.ge.f32.partialorder %v1754_v5, 0.0  ;;  %v1818_v11 = vmul.f32 0.01, %v1754_v5  ;;  %v1753_v40 = vadd.f32 %v3092_v53, %v1714_v6  ;;  %v1717_v12 = vmul.f32 %v3087_v48, %v1678_v7  ;;  %v1608_v14 = vpop.f32.mrf.mxu0 }
 0x157   : > { %v1847_v16 = vsel %vm1783_vm3, %v1751_v4, %v1815_v21  ;;  %v1677_v18 = vadd.f32 %v1598_v2, %v1239_v8  ;;  %v1254_v44 = vadd.f32 %v2484_v10, %v3046_v25  ;;  %v1248_v23 = vpop.f32.mrf.mxu1 }
 0x158   : > { %1879 = vst [vmem:[%s3102_s18 + $0x80] sm:$0xff] %v1847_v16  ;;  %v1850_v30 = vsel %vm1786_vm4, %v1754_v5, %v1818_v11  ;;  %vm1785_vm5 = vcmp.ge.f32.partialorder %v1753_v40, 0.0  ;;  %v1817_v45 = vmul.f32 0.01, %v1753_v40  ;;  %v1756_v20 = vadd.f32 %v3092_v53, %v1717_v12  ;;  %v2539_v42 = vpop.f32.mrf.mxu0 }
 0x159   : > { %1882 = vst [vmem:[%s3102_s18 + $0x98] sm:$0xff] %v1850_v30  ;;  %v1716_v46 = vmul.f32 %v3087_v48, %v1677_v18  ;;  %v1680_v47 = vadd.f32 %v2536_v28, %v1254_v44  ;;  %v1249_v49 = vadd.f32 %v1248_v23, %v3050_v27  ;;  %v2487_v50 = vpop.f32.mrf.mxu1 }
 0x15a   : > { %v1849_v51 = vsel %vm1785_vm5, %v1753_v40, %v1817_v45  ;;  %vm1788_vm6 = vcmp.ge.f32.partialorder %v1756_v20, 0.0  ;;  %v1820_v25 = vmul.f32 0.01, %v1756_v20  ;;  %v1264_v52 = vadd.f32 %v2487_v50, %v3054_v29  ;;  %v1618_v54 = vpop.f32.mrf.mxu0 }
 0x15b   : > { %1881 = vst [vmem:[%s3102_s18 + $0x90] sm:$0xff] %v1849_v51  ;;  %v1755_v32 = vadd.f32 %v3092_v53, %v1716_v46  ;;  %v1719_v55 = vmul.f32 %v3087_v48, %v1680_v47  ;;  %v1679_v13 = vadd.f32 %v1608_v14, %v1249_v49  ;;  %v1258_v56 = vpop.f32.mrf.mxu1 }
 0x15c   : > { %v1852_v22 = vsel %vm1788_vm6, %v1756_v20, %v1820_v25  ;;  %v1682_v57 = vadd.f32 %v2539_v42, %v1264_v52  ;;  %v1259_v58 = vadd.f32 %v1258_v56, %v3058_v31  ;;  %v2542_v27 = vpop.f32.mrf.mxu0 }
 0x15d   : > { %1884 = vst [vmem:[%s3102_s18 + $0xa8] sm:$0xff] %v1852_v22  ;;  %vm1787_vm7 = vcmp.ge.f32.partialorder %v1755_v32, 0.0  ;;  %v1819_v24 = vmul.f32 0.01, %v1755_v32  ;;  %v1758_v59 = vadd.f32 %v3092_v53, %v1719_v55  ;;  %v1718_v29 = vmul.f32 %v3087_v48, %v1679_v13  ;;  %v2490_v60 = vpop.f32.mrf.mxu1 }
 0x15e   : > { %v1721_v61 = vmul.f32 %v3087_v48, %v1682_v57  ;;  %v1681_v34 = vadd.f32 %v1618_v54, %v1259_v58  ;;  %v1274_v15 = vadd.f32 %v2490_v60, %v3062_v33  ;;  %v1628_v62 = vpop.f32.mrf.mxu0  ;;  %v1999_v60 = vld [vmem:[%s3102_s18 + $0x10] sm:$0xff] (%p2668_p5) }
 0x15f   : > { %v1851_v63 = vsel %vm1787_vm7, %v1755_v32, %v1819_v24  ;;  %vm1790_vm8 = vcmp.ge.f32.partialorder %v1758_v59, 0.0  ;;  %v1822_v31 = vmul.f32 0.01, %v1758_v59  ;;  %v1757_v17 = vadd.f32 %v3092_v53, %v1718_v29  ;;  %v1268_v36 = vpop.f32.mrf.mxu1  ;;  %2000 = vst [vmem:[%s3230_s27 + $0x20] sm:$0xff] (%p2668_p5), %v1999_v60 }
 0x160   : > { %1883 = vst [vmem:[%s3102_s18 + $0xa0] sm:$0xff] %v1851_v63  ;;  %v1760_v0 = vadd.f32 %v3092_v53, %v1721_v61  ;;  %v1720_v26 = vmul.f32 %v3087_v48, %v1681_v34  ;;  %v1684_v1 = vadd.f32 %v2542_v27, %v1274_v15  ;;  %v1269_v2 = vadd.f32 %v1268_v36, %v3066_v35  ;;  %v2545_v3 = vpop.f32.mrf.mxu0  ;;  %v2001_v61 = vld [vmem:[%s3102_s18 + $0x18] sm:$0xff] (%p2668_p5)  ;;  %v2003_v34 = vld [vmem:[%s3102_s18 + $0x20] sm:$0xff] (%p2668_p5)  ;;  %v2005_v15 = vld [vmem:[%s3102_s18 + $0x28] sm:$0xff] (%p2668_p5) }
 0x161   : > { %v1854_v19 = vsel %vm1790_vm8, %v1758_v59, %v1822_v31  ;;  %vm1789_vm9 = vcmp.ge.f32.partialorder %v1757_v17, 0.0  ;;  %v1821_v33 = vmul.f32 0.01, %v1757_v17  ;;  %v2493_v4 = vpop.f32.mrf.mxu1  ;;  %2002 = vst [vmem:[%s3230_s27 + $0x28] sm:$0xff] (%p2668_p5), %v2001_v61  ;;  %2004 = vst [vmem:[%s3230_s27 + $0x40] sm:$0xff] (%p2668_p5), %v2003_v34  ;;  %v2009_v63 = vld [vmem:[%s3102_s18 + $0x38] sm:$0xff] (%p2668_p5) }
 0x162   : > { %1886 = vst [vmem:[%s3102_s18 + $0xb8] sm:$0xff] %v1854_v19  ;;  %vm1792_vm10 = vcmp.ge.f32.partialorder %v1760_v0, 0.0  ;;  %v1824_v38 = vmul.f32 0.01, %v1760_v0  ;;  %v1759_v5 = vadd.f32 %v3092_v53, %v1720_v26  ;;  %v1723_v6 = vmul.f32 %v3087_v48, %v1684_v1  ;;  %v1638_v7 = vpop.f32.mrf.mxu0  ;;  %2006 = vst [vmem:[%s3230_s27 + $0x48] sm:$0xff] (%p2668_p5), %v2005_v15  ;;  %v2011_v31 = vld [vmem:[%s3102_s18 + $0x40] sm:$0xff] (%p2668_p5) }
 0x163   : > { %v1853_v8 = vsel %vm1789_vm9, %v1757_v17, %v1821_v33  ;;  %v1683_v28 = vadd.f32 %v1628_v62, %v1269_v2  ;;  %v1284_v9 = vadd.f32 %v2493_v4, %v3070_v37  ;;  %v1278_v35 = vpop.f32.mrf.mxu1  ;;  %v2007_v62 = vld [vmem:[%s3102_s18 + $0x30] sm:$0xff] (%p2668_p5)  ;;  %2010 = vst [vmem:[%s3230_s27 + $0x68] sm:$0xff] (%p2668_p5), %v2009_v63  ;;  %2012 = vst [vmem:[%s3230_s27 + $0x80] sm:$0xff] (%p2668_p5), %v2011_v31  ;;  %v2013_v17 = vld [vmem:[%s3102_s18 + $0x48] sm:$0xff] (%p2668_p5) }
 0x164   : > { %1885 = vst [vmem:[%s3102_s18 + $0xb0] sm:$0xff] %v1853_v8  ;;  %v1856_v21 = vsel %vm1792_vm10, %v1760_v0, %v1824_v38  ;;  %vm1791_vm11 = vcmp.ge.f32.partialorder %v1759_v5, 0.0  ;;  %v1823_v10 = vmul.f32 0.01, %v1759_v5  ;;  %v1762_v11 = vadd.f32 %v3092_v53, %v1723_v6  ;;  %v2548_v18 = vpop.f32.mrf.mxu0  ;;  %2008 = vst [vmem:[%s3230_s27 + $0x60] sm:$0xff] (%p2668_p5), %v2007_v62  ;;  %v2015_v36 = vld [vmem:[%s3102_s18 + $0x50] sm:$0xff] (%p2668_p5) }
 0x165   : > { %1888 = vst [vmem:[%s3102_s18 + $0xc8] sm:$0xff] %v1856_v21  ;;  %v1722_v40 = vmul.f32 %v3087_v48, %v1683_v28  ;;  %v1686_v12 = vadd.f32 %v2545_v3, %v1284_v9  ;;  %v1279_v14 = vadd.f32 %v1278_v35, %v3074_v39  ;;  %v2496_v16 = vpop.f32.mrf.mxu1  ;;  %v2017_v0 = vld [vmem:[%s3102_s18 + $0x58] sm:$0xff] (%p2668_p5)  ;;  %2014 = vst [vmem:[%s3230_s27 + $0x88] sm:$0xff] (%p2668_p5), %v2013_v17  ;;  %v2019_v26 = vld [vmem:[%s3102_s18 + $0x60] sm:$0xff] (%p2668_p5) }
 0x166   : > { %v1855_v44 = vsel %vm1791_vm11, %v1759_v5, %v1823_v10  ;;  %vm1794_vm12 = vcmp.ge.f32.partialorder %v1762_v11, 0.0  ;;  %v1826_v37 = vmul.f32 0.01, %v1762_v11  ;;  %v1294_v23 = vadd.f32 %v2496_v16, %v3078_v41  ;;  %v1648_v51 = vpop.f32.mrf.mxu0  ;;  %2016 = vst [vmem:[%s3230_s27 + $0xa0] sm:$0xff] (%p2668_p5), %v2015_v36  ;;  %2018 = vst [vmem:[%s3230_s27 + $0xa8] sm:$0xff] (%p2668_p5), %v2017_v0  ;;  %v2021_v1 = vld [vmem:[%s3102_s18 + $0x68] sm:$0xff] (%p2668_p5) }
 0x167   : > { %1887 = vst [vmem:[%s3102_s18 + $0xc0] sm:$0xff] %v1855_v44  ;;  %v1761_v30 = vadd.f32 %v3092_v53, %v1722_v40  ;;  %v1725_v45 = vmul.f32 %v3087_v48, %v1686_v12  ;;  %v1685_v20 = vadd.f32 %v1638_v7, %v1279_v14  ;;  %v1288_v42 = vpop.f32.mrf.mxu1  ;;  %v2023_v2 = vld [vmem:[%s3102_s18 + $0x70] sm:$0xff] (%p2668_p5)  ;;  %2020 = vst [vmem:[%s3230_s27 + $0xc0] sm:$0xff] (%p2668_p5), %v2019_v26  ;;  %v2025_v3 = vld [vmem:[%s3102_s18 + $0x78] sm:$0xff] (%p2668_p5) }
 0x168   : > { %v1858_v46 = vsel %vm1794_vm12, %v1762_v11, %v1826_v37  ;;  %v1688_v47 = vadd.f32 %v2548_v18, %v1294_v23  ;;  %v1289_v49 = vadd.f32 %v1288_v42, %v3082_v43  ;;  %2022 = vst [vmem:[%s3230_s27 + $0xc8] sm:$0xff] (%p2668_p5), %v2021_v1  ;;  %2024 = vst [vmem:[%s3230_s27 + $0xe0] sm:$0xff] (%p2668_p5), %v2023_v2  ;;  %v2027_v19 = vld [vmem:[%s3102_s18 + $0x80] sm:$0xff] (%p2668_p5)  ;;  %v2029_v33 = vld [vmem:[%s3102_s18 + $0x88] sm:$0xff] (%p2668_p5) }
 0x169   : > { %1890 = vst [vmem:[%s3102_s18 + $0xd8] sm:$0xff] %v1858_v46  ;;  %vm1793_vm13 = vcmp.ge.f32.partialorder %v1761_v30, 0.0  ;;  %v1825_v39 = vmul.f32 0.01, %v1761_v30  ;;  %v1764_v50 = vadd.f32 %v3092_v53, %v1725_v45  ;;  %v1724_v41 = vmul.f32 %v3087_v48, %v1685_v20  ;;  %2026 = vst [vmem:[%s3230_s27 + $0xe8] sm:$0xff] (%p2668_p5), %v2025_v3  ;;  %v2031_v4 = vld [vmem:[%s3102_s18 + $0x90] sm:$0xff] (%p2668_p5) }
 0x16a   : > { %v1727_v25 = vmul.f32 %v3087_v48, %v1688_v47  ;;  %v1687_v52 = vadd.f32 %v1648_v51, %v1289_v49  ;;  %2028 = vst [vmem:[%s3230_s27 + $0x100] sm:$0xff] (%p2668_p5), %v2027_v19  ;;  %2030 = vst [vmem:[%s3230_s27 + $0x108] sm:$0xff] (%p2668_p5), %v2029_v33  ;;  %v2033_v38 = vld [vmem:[%s3102_s18 + $0x98] sm:$0xff] (%p2668_p5)  ;;  %v2035_v5 = vld [vmem:[%s3102_s18 + $0xa0] sm:$0xff] (%p2668_p5) }
 0x16b   : > { %v1857_v54 = vsel %vm1793_vm13, %v1761_v30, %v1825_v39  ;;  %vm1796_vm14 = vcmp.ge.f32.partialorder %v1764_v50, 0.0  ;;  %v1828_v32 = vmul.f32 0.01, %v1764_v50  ;;  %v1763_v55 = vadd.f32 %v3092_v53, %v1724_v41  ;;  %2032 = vst [vmem:[%s3230_s27 + $0x120] sm:$0xff] (%p2668_p5), %v2031_v4  ;;  %2034 = vst [vmem:[%s3230_s27 + $0x128] sm:$0xff] (%p2668_p5), %v2033_v38  ;;  %v2037_v6 = vld [vmem:[%s3102_s18 + $0xa8] sm:$0xff] (%p2668_p5) }
 0x16c   : > { %1889 = vst [vmem:[%s3102_s18 + $0xd0] sm:$0xff] %v1857_v54  ;;  %v1766_v43 = vadd.f32 %v3092_v53, %v1727_v25  ;;  %v1726_v13 = vmul.f32 %v3087_v48, %v1687_v52  ;;  %v1995_v48 = vld [vmem:[%s3102_s18] sm:$0xff] (%p2668_p5)  ;;  %2036 = vst [vmem:[%s3230_s27 + $0x140] sm:$0xff] (%p2668_p5), %v2035_v5  ;;  %v2039_v7 = vld [vmem:[%s3102_s18 + $0xb0] sm:$0xff] (%p2668_p5) }
 0x16d   : > { %v1860_v56 = vsel %vm1796_vm14, %v1764_v50, %v1828_v32  ;;  %vm1795_vm15 = vcmp.ge.f32.partialorder %v1763_v55, 0.0  ;;  %v1827_v22 = vmul.f32 0.01, %v1763_v55  ;;  %1996 = vst [vmem:[%s3230_s27] sm:$0xff] (%p2668_p5), %v1995_v48  ;;  %v2041_v8 = vld [vmem:[%s3102_s18 + $0xb8] sm:$0xff] (%p2668_p5)  ;;  %2038 = vst [vmem:[%s3230_s27 + $0x148] sm:$0xff] (%p2668_p5), %v2037_v6  ;;  %v2045_v9 = vld [vmem:[%s3102_s18 + $0xc8] sm:$0xff] (%p2668_p5) }
 0x16e   : > { %1892 = vst [vmem:[%s3102_s18 + $0xe8] sm:$0xff] %v1860_v56  ;;  %vm1798_vm0 = vcmp.ge.f32.partialorder %v1766_v43, 0.0  ;;  %v1830_v57 = vmul.f32 0.01, %v1766_v43  ;;  %v1765_v58 = vadd.f32 %v3092_v53, %v1726_v13  ;;  %v1997_v53 = vld [vmem:[%s3102_s18 + $0x8] sm:$0xff] (%p2668_p5)  ;;  %2040 = vst [vmem:[%s3230_s27 + $0x160] sm:$0xff] (%p2668_p5), %v2039_v7 }
 0x16f   : > { %v1859_v27 = vsel %vm1795_vm15, %v1763_v55, %v1827_v22  ;;  %1901 = sbr.rel (!%p2668_p5) target bundleno = 380 (0x17c), region = 120  ;;  %1998 = vst [vmem:[%s3230_s27 + $0x8] sm:$0xff] (%p2668_p5), %v1997_v53  ;;  %2042 = vst [vmem:[%s3230_s27 + $0x168] sm:$0xff] (%p2668_p5), %v2041_v8  ;;  %v2043_v28 = vld [vmem:[%s3102_s18 + $0xc0] sm:$0xff] (%p2668_p5) }
 0x170   : > { %1891 = vst [vmem:[%s3102_s18 + $0xe0] sm:$0xff] %v1859_v27  ;;  %v1862_v24 = vsel %vm1798_vm0, %v1766_v43, %v1830_v57  ;;  %vm1797_vm1 = vcmp.ge.f32.partialorder %v1765_v58, 0.0  ;;  %v1829_v59 = vmul.f32 0.01, %v1765_v58  ;;  %2044 = vst [vmem:[%s3230_s27 + $0x180] sm:$0xff] (%p2668_p5), %v2043_v28  ;;  %v2049_v21 = vld [vmem:[%s3102_s18 + $0xd8] sm:$0xff] (%p2668_p5) }
 0x171   : > { %1894 = vst [vmem:[%s3102_s18 + $0xf8] sm:$0xff] %v1862_v24  ;;  %2046 = vst [vmem:[%s3230_s27 + $0x188] sm:$0xff] (%p2668_p5), %v2045_v9 }
 0x172   : > { %v1861_v29 = vsel %vm1797_vm1, %v1765_v58, %v1829_v59  ;;  %2050 = vst [vmem:[%s3230_s27 + $0x1a8] sm:$0xff] (%p2668_p5), %v2049_v21 }
 0x173   : > { %1893 = vst [vmem:[%s3102_s18 + $0xf0] sm:$0xff] %v1861_v29  ;;  %v2047_v35 = vld [vmem:[%s3102_s18 + $0xd0] sm:$0xff] (%p2668_p5) }
 0x174   : > { %2048 = vst [vmem:[%s3230_s27 + $0x1a0] sm:$0xff] %v2047_v35 }
 0x175   : > { %v2053_v11 = vld [vmem:[%s3102_s18 + $0xe8] sm:$0xff] }
 0x176   : > { %2054 = vst [vmem:[%s3230_s27 + $0x1c8] sm:$0xff] %v2053_v11 }
 0x177   : > { %v2051_v10 = vld [vmem:[%s3102_s18 + $0xe0] sm:$0xff] }
 0x178   : > { %2052 = vst [vmem:[%s3230_s27 + $0x1c0] sm:$0xff] %v2051_v10  ;;  %v2057_v12 = vld [vmem:[%s3102_s18 + $0xf8] sm:$0xff] }
 0x179   : > { %2058 = vst [vmem:[%s3230_s27 + $0x1e8] sm:$0xff] %v2057_v12 }
 0x17a   : > { %v2055_v40 = vld [vmem:[%s3102_s18 + $0xf0] sm:$0xff] }
 0x17b   : > { %2056 = vst [vmem:[%s3230_s27 + $0x1e0] sm:$0xff] %v2055_v40 }
 0x17c PF: > { %p12_p10 = scmp.ge.s32.totalorder %s2651_s22, 4   ;;  %s3311_s18 = smov %s2598_s19 }
 0x17d   : > { %s3312_s19 = smov %s2662_s25  ;;  %s3313_s20 = smov %s2651_s22 }
 0x17e   :  { %14 = sbr.rel (!%p12_p10) target bundleno = 2 (0x2), region = 200 }

</bundles_post_ra>
